<compile_context>
chip_gen: v7x
topology: tpu7x:2x2x1
jax: 0.10.0
libtpu: 0.0.40
codegen_flags: <defaults>
</compile_context>

<pallas_src>
import functools
import math

import jax
import jax.numpy as jnp
from jax import lax
from jax.experimental import pallas as pl
from jax.experimental.pallas import tpu as pltpu


def _gelu_exact(x):
    # nn.GELU() default (approximate='none'): 0.5*x*(1+erf(x/sqrt(2)))
    return 0.5 * x * (1.0 + lax.erf(x * (1.0 / math.sqrt(2.0))))


def synthesizer_kernel(x_ref, v_ref, wq1_ref, wq2_ref, wv_ref, wo_ref, b_ref,
                       o_ref, y_scratch, *, H, D_H, F_H):
    # x_ref   : (tN, D)          activations for this (batch, N-tile); heads
    #                            concatenated along D (matches X.view(B,N,H,D_H))
    # v_ref   : (H, M, F_H)      per-batch values, head-major, bf16 (MXU operand)
    # wq1_ref : (tN, D)          diag(W_Q_1) flattened to the same (N, D) layout
    # wq2_ref : (H, D_H, tN, M)  W_Q_2 transposed so M sits on lanes
    # wv_ref  : (H, 1, F_H)      diag(W_V)
    # wo_ref  : (F, F)           O.weight.T, bf16 (MXU operand)
    # b_ref   : (1, F)           O.bias (f32)
    # o_ref   : (tN, F)
    # y_scratch: (tN, F) f32 VMEM slab collecting per-head Y columns
    M = v_ref.shape[1]

    # Lane-dense diagonal scale + exact GELU on the full (tN, D) slab, f32 VPU.
    q1_all = _gelu_exact(x_ref[...] * wq1_ref[...])              # (tN, D)

    for h in range(H):                     # H is small & static -> unrolled
        # q2[n, m] = sum_d q1[n, h*D_H + d] * W_Q_2[h, n, m, d]
        # unrolled lane-dense (tN, M) FMAs; each wq2 slice is a clean 2D load.
        c0 = h * D_H
        q2 = q1_all[:, c0:c0 + 1] * wq2_ref[h, 0]                # (tN, M)
        for d in range(1, D_H):
            q2 = q2 + q1_all[:, c0 + d:c0 + d + 1] * wq2_ref[h, d]

        # softmax over m (lanes); reciprocal goes to the EUP slot.
        q2 = q2 - jnp.max(q2, axis=-1, keepdims=True)
        e = jnp.exp(q2)
        p = e * pl.reciprocal(jnp.sum(e, axis=-1, keepdims=True), approx=True)

        # Y_h = (p @ V_h) * diag(W_V)_h  -- bf16 MXU operands, f32 accumulate.
        yh = jnp.dot(p.astype(jnp.bfloat16), v_ref[h],
                     preferred_element_type=jnp.float32)         # (tN, F_H)
        y_scratch[:, h * F_H:(h + 1) * F_H] = yh * wv_ref[h]

    # Single lane-dense output projection: (tN, F) @ (F, F) on the MXU.
    y_all = y_scratch[...].astype(jnp.bfloat16)
    o_ref[...] = jnp.dot(y_all, wo_ref[...],
                         preferred_element_type=jnp.float32) + b_ref[...]


def _pick_tile_n(N):
    # Full block if small; otherwise a multiple of 8 that divides N.
    if N <= 256:
        return N
    for t in (256, 128, 64, 32, 16, 8):
        if N % t == 0:
            return t
    return N


def synthesizer_forward(X, V, W_Q_1, W_Q_2, W_V, O_w, O_b, *, H, tile_n=None):
    B, N, D = X.shape
    _, M, F = V.shape
    D_H = D // H
    F_H = F // H
    if tile_n is None:
        tile_n = _pick_tile_n(N)
    assert N % tile_n == 0 and (tile_n == N or tile_n % 8 == 0)

    # Glue: reshape / transpose / diagonal extraction only (no compute hoisted).
    v_h = V.reshape(B, M, H, F_H).transpose(0, 2, 1, 3).astype(jnp.bfloat16)
    wq1_diag = jnp.diagonal(W_Q_1, axis1=2, axis2=3)                 # (H, N, D_H)
    wq1_flat = wq1_diag.transpose(1, 0, 2).reshape(N, D)             # (N, D)
    wq2_t = W_Q_2.transpose(0, 3, 1, 2)                              # (H, D_H, N, M)
    wv_diag = jnp.diagonal(W_V, axis1=1, axis2=2).reshape(H, 1, F_H)
    wo = O_w.T.astype(jnp.bfloat16)                                  # (F, F)
    bias = O_b.reshape(1, F).astype(jnp.float32)
    # NOTE: for real model sizes pad F to a multiple of 128 in glue so the
    # output store is lane-dense; at the test size F < 128 it is one tile.
    # NOTE: wv/wo/bias are constant across the grid; single-buffering them
    # (pipeline_mode=pl.Buffered(1)) would reclaim VMEM on v7x if needed.

    grid = (B, N // tile_n)
    kernel = functools.partial(synthesizer_kernel, H=H, D_H=D_H, F_H=F_H)
    return pl.pallas_call(
        kernel,
        out_shape=jax.ShapeDtypeStruct((B, N, F), jnp.float32),
        grid_spec=pltpu.PrefetchScalarGridSpec(
            num_scalar_prefetch=0,
            grid=grid,
            in_specs=[
                pl.BlockSpec((None, tile_n, D), lambda b, n: (b, n, 0)),        # X
                pl.BlockSpec((None, H, M, F_H), lambda b, n: (b, 0, 0, 0)),     # V (bf16)
                pl.BlockSpec((tile_n, D), lambda b, n: (n, 0)),                 # diag(W_Q_1)
                pl.BlockSpec((H, D_H, tile_n, M), lambda b, n: (0, 0, n, 0)),   # W_Q_2^T
                pl.BlockSpec((H, 1, F_H), lambda b, n: (0, 0, 0)),              # diag(W_V)
                pl.BlockSpec((F, F), lambda b, n: (0, 0)),                      # O_w.T (bf16)
                pl.BlockSpec((1, F), lambda b, n: (0, 0)),                      # O_b
            ],
            out_specs=pl.BlockSpec((None, tile_n, F), lambda b, n: (b, n, 0)),
            scratch_shapes=[pltpu.VMEM((tile_n, F), jnp.float32)],
        ),
        compiler_params=pltpu.CompilerParams(
            dimension_semantics=("parallel", "parallel"),
            vmem_limit_bytes=32 * 1024 * 1024,
        ),
    )(X, v_h, wq1_flat, wq2_t, wv_diag, wo, bias)


def reference_forward(X, V, W_Q_1, W_Q_2, W_V, O_w, O_b, *, H):
    """Plain-JAX replica of the PyTorch forward (torch einsum diag semantics)."""
    B, N, D = X.shape
    _, M, F = V.shape
    D_H = D // H
    F_H = F // H
    Xr = X.reshape(B, N, H, D_H)
    Vr = V.reshape(B, M, H, F_H)
    wq1d = jnp.diagonal(W_Q_1, axis1=2, axis2=3)                  # (H, N, D_H)
    Q1 = jnp.einsum('bnhd,hnd->bhnd', Xr, wq1d)
    Q1 = 0.5 * Q1 * (1.0 + jax.scipy.special.erf(Q1 / jnp.sqrt(2.0)))
    Q2 = jnp.einsum('bhnd,hnmd->bhnm', Q1, W_Q_2)
    Q2 = jax.nn.softmax(Q2, axis=3)
    wvd = jnp.diagonal(W_V, axis1=1, axis2=2)                     # (H, F_H)
    Y = jnp.einsum('bhnm,bmhf,hf->bnhf', Q2, Vr, wvd)
    Y = Y.reshape(B, N, F)
    return Y @ O_w.T + O_b


if __name__ == "__main__":
    # Small, forward-consistent shapes.
    B, N, M, D, F, H, K = 2, 8, 8, 32, 32, 4, 2   # K unused in forward
    D_H, F_H = D // H, F // H

    key = jax.random.PRNGKey(0)
    ks = jax.random.split(key, 7)
    W_Q_1 = 0.02 * jax.random.normal(ks[0], (H, N, D_H, D_H), jnp.float32)
    W_Q_2 = 0.02 * jax.random.normal(ks[1], (H, N, M, D_H), jnp.float32)
    W_V = 0.02 * jax.random.normal(ks[2], (H, F_H, F_H), jnp.float32)
    O_w = 0.02 * jax.random.normal(ks[3], (F, F), jnp.float32)     # torch Linear: (out, in)
    O_b = 0.02 * jax.random.normal(ks[4], (F,), jnp.float32)
    X = jax.random.normal(ks[5], (B, N, D), jnp.float32)
    V = jax.random.normal(ks[6], (B, M, F), jnp.float32)

    out = synthesizer_forward(X, V, W_Q_1, W_Q_2, W_V, O_w, O_b, H=H)
    out = jax.block_until_ready(out)

    ref = reference_forward(X, V, W_Q_1, W_Q_2, W_V, O_w, O_b, H=H)
    assert out.shape == (B, N, F)
    assert jnp.allclose(out, ref, atol=1e-3, rtol=1e-3), \
        f"max abs err {jnp.max(jnp.abs(out - ref))}"
    print("KERNEL_OK")
</pallas_src>

<mosaic_0001>
module attributes {stable_mosaic.version = 11 : i64} {
  func.func @synthesizer_kernel(%arg0: i32, %arg1: i32, %arg2: memref<1x8x32xf32, #tpu.memory_space<vmem>>, %arg3: memref<1x4x8x8xbf16, #tpu.memory_space<vmem>>, %arg4: memref<8x32xf32, #tpu.memory_space<vmem>>, %arg5: memref<4x8x8x8xf32, #tpu.memory_space<vmem>>, %arg6: memref<4x1x8xf32, #tpu.memory_space<vmem>>, %arg7: memref<32x32xbf16, #tpu.memory_space<vmem>>, %arg8: memref<1x32xf32, #tpu.memory_space<vmem>>, %arg9: memref<1x8x32xf32, #tpu.memory_space<vmem>>, %arg10: memref<8x32xf32, #tpu.memory_space<vmem>>) attributes {dimension_semantics = [#tpu.dimension_semantics<parallel>, #tpu.dimension_semantics<parallel>], iteration_bounds = array<i64: 2, 1>, scalar_prefetch = 0 : i64, scratch_operands = 1 : i64, tpu.core_type = #tpu.core_type<tc>, window_params = [{transform_indices = @transform_0, window_bounds = array<i64: 1, 8, 32>}, {transform_indices = @transform_1, window_bounds = array<i64: 1, 4, 8, 8>}, {transform_indices = @transform_2, window_bounds = array<i64: 8, 32>}, {transform_indices = @transform_3, window_bounds = array<i64: 4, 8, 8, 8>}, {pipeline_mode = #tpu.pipeline_mode<synchronous>, transform_indices = @transform_4, window_bounds = array<i64: 4, 1, 8>}, {pipeline_mode = #tpu.pipeline_mode<synchronous>, transform_indices = @transform_5, window_bounds = array<i64: 32, 32>}, {pipeline_mode = #tpu.pipeline_mode<synchronous>, transform_indices = @transform_6, window_bounds = array<i64: 1, 32>}, {transform_indices = @transform_7, window_bounds = array<i64: 1, 8, 32>}]} {
    %c0 = arith.constant 0 : index
    %c0_0 = arith.constant 0 : index
    %c0_1 = arith.constant 0 : index
    %0 = vector.load %arg2[%c0, %c0_0, %c0_1] : memref<1x8x32xf32, #tpu.memory_space<vmem>>, vector<1x8x32xf32>
    %1 = vector.shape_cast %0 : vector<1x8x32xf32> to vector<8x32xf32>
    %c0_2 = arith.constant 0 : index
    %c0_3 = arith.constant 0 : index
    %2 = vector.load %arg4[%c0_2, %c0_3] : memref<8x32xf32, #tpu.memory_space<vmem>>, vector<8x32xf32>
    %3 = arith.mulf %1, %2 : vector<8x32xf32>
    %cst = arith.constant 5.000000e-01 : f32
    %4 = vector.broadcast %cst : f32 to vector<8x32xf32>
    %5 = arith.mulf %4, %3 : vector<8x32xf32>
    %cst_4 = arith.constant 0.707106769 : f32
    %6 = vector.broadcast %cst_4 : f32 to vector<8x32xf32>
    %7 = arith.mulf %3, %6 : vector<8x32xf32>
    %8 = math.erf %7 : vector<8x32xf32>
    %cst_5 = arith.constant 1.000000e+00 : f32
    %9 = vector.broadcast %cst_5 : f32 to vector<8x32xf32>
    %10 = arith.addf %9, %8 : vector<8x32xf32>
    %11 = arith.mulf %5, %10 : vector<8x32xf32>
    %12 = vector.extract_strided_slice %11 {offsets = [0, 0], sizes = [8, 1], strides = [1, 1]} : vector<8x32xf32> to vector<8x1xf32>
    %c0_6 = arith.constant 0 : index
    %c0_7 = arith.constant 0 : index
    %c0_8 = arith.constant 0 : index
    %c0_9 = arith.constant 0 : index
    %13 = vector.load %arg5[%c0_6, %c0_7, %c0_8, %c0_9] : memref<4x8x8x8xf32, #tpu.memory_space<vmem>>, vector<1x1x8x8xf32>
    %14 = vector.shape_cast %13 : vector<1x1x8x8xf32> to vector<8x8xf32>
    %15 = vector.broadcast %12 : vector<8x1xf32> to vector<8x8xf32>
    %16 = arith.mulf %15, %14 : vector<8x8xf32>
    %17 = vector.extract_strided_slice %11 {offsets = [0, 1], sizes = [8, 1], strides = [1, 1]} : vector<8x32xf32> to vector<8x1xf32>
    %c0_10 = arith.constant 0 : index
    %c1 = arith.constant 1 : index
    %c0_11 = arith.constant 0 : index
    %c0_12 = arith.constant 0 : index
    %18 = vector.load %arg5[%c0_10, %c1, %c0_11, %c0_12] : memref<4x8x8x8xf32, #tpu.memory_space<vmem>>, vector<1x1x8x8xf32>
    %19 = vector.shape_cast %18 : vector<1x1x8x8xf32> to vector<8x8xf32>
    %20 = vector.broadcast %17 : vector<8x1xf32> to vector<8x8xf32>
    %21 = arith.mulf %20, %19 : vector<8x8xf32>
    %22 = arith.addf %16, %21 : vector<8x8xf32>
    %23 = vector.extract_strided_slice %11 {offsets = [0, 2], sizes = [8, 1], strides = [1, 1]} : vector<8x32xf32> to vector<8x1xf32>
    %c0_13 = arith.constant 0 : index
    %c2 = arith.constant 2 : index
    %c0_14 = arith.constant 0 : index
    %c0_15 = arith.constant 0 : index
    %24 = vector.load %arg5[%c0_13, %c2, %c0_14, %c0_15] : memref<4x8x8x8xf32, #tpu.memory_space<vmem>>, vector<1x1x8x8xf32>
    %25 = vector.shape_cast %24 : vector<1x1x8x8xf32> to vector<8x8xf32>
    %26 = vector.broadcast %23 : vector<8x1xf32> to vector<8x8xf32>
    %27 = arith.mulf %26, %25 : vector<8x8xf32>
    %28 = arith.addf %22, %27 : vector<8x8xf32>
    %29 = vector.extract_strided_slice %11 {offsets = [0, 3], sizes = [8, 1], strides = [1, 1]} : vector<8x32xf32> to vector<8x1xf32>
    %c0_16 = arith.constant 0 : index
    %c3 = arith.constant 3 : index
    %c0_17 = arith.constant 0 : index
    %c0_18 = arith.constant 0 : index
    %30 = vector.load %arg5[%c0_16, %c3, %c0_17, %c0_18] : memref<4x8x8x8xf32, #tpu.memory_space<vmem>>, vector<1x1x8x8xf32>
    %31 = vector.shape_cast %30 : vector<1x1x8x8xf32> to vector<8x8xf32>
    %32 = vector.broadcast %29 : vector<8x1xf32> to vector<8x8xf32>
    %33 = arith.mulf %32, %31 : vector<8x8xf32>
    %34 = arith.addf %28, %33 : vector<8x8xf32>
    %35 = vector.extract_strided_slice %11 {offsets = [0, 4], sizes = [8, 1], strides = [1, 1]} : vector<8x32xf32> to vector<8x1xf32>
    %c0_19 = arith.constant 0 : index
    %c4 = arith.constant 4 : index
    %c0_20 = arith.constant 0 : index
    %c0_21 = arith.constant 0 : index
    %36 = vector.load %arg5[%c0_19, %c4, %c0_20, %c0_21] : memref<4x8x8x8xf32, #tpu.memory_space<vmem>>, vector<1x1x8x8xf32>
    %37 = vector.shape_cast %36 : vector<1x1x8x8xf32> to vector<8x8xf32>
    %38 = vector.broadcast %35 : vector<8x1xf32> to vector<8x8xf32>
    %39 = arith.mulf %38, %37 : vector<8x8xf32>
    %40 = arith.addf %34, %39 : vector<8x8xf32>
    %41 = vector.extract_strided_slice %11 {offsets = [0, 5], sizes = [8, 1], strides = [1, 1]} : vector<8x32xf32> to vector<8x1xf32>
    %c0_22 = arith.constant 0 : index
    %c5 = arith.constant 5 : index
    %c0_23 = arith.constant 0 : index
    %c0_24 = arith.constant 0 : index
    %42 = vector.load %arg5[%c0_22, %c5, %c0_23, %c0_24] : memref<4x8x8x8xf32, #tpu.memory_space<vmem>>, vector<1x1x8x8xf32>
    %43 = vector.shape_cast %42 : vector<1x1x8x8xf32> to vector<8x8xf32>
    %44 = vector.broadcast %41 : vector<8x1xf32> to vector<8x8xf32>
    %45 = arith.mulf %44, %43 : vector<8x8xf32>
    %46 = arith.addf %40, %45 : vector<8x8xf32>
    %47 = vector.extract_strided_slice %11 {offsets = [0, 6], sizes = [8, 1], strides = [1, 1]} : vector<8x32xf32> to vector<8x1xf32>
    %c0_25 = arith.constant 0 : index
    %c6 = arith.constant 6 : index
    %c0_26 = arith.constant 0 : index
    %c0_27 = arith.constant 0 : index
    %48 = vector.load %arg5[%c0_25, %c6, %c0_26, %c0_27] : memref<4x8x8x8xf32, #tpu.memory_space<vmem>>, vector<1x1x8x8xf32>
    %49 = vector.shape_cast %48 : vector<1x1x8x8xf32> to vector<8x8xf32>
    %50 = vector.broadcast %47 : vector<8x1xf32> to vector<8x8xf32>
    %51 = arith.mulf %50, %49 : vector<8x8xf32>
    %52 = arith.addf %46, %51 : vector<8x8xf32>
    %53 = vector.extract_strided_slice %11 {offsets = [0, 7], sizes = [8, 1], strides = [1, 1]} : vector<8x32xf32> to vector<8x1xf32>
    %c0_28 = arith.constant 0 : index
    %c7 = arith.constant 7 : index
    %c0_29 = arith.constant 0 : index
    %c0_30 = arith.constant 0 : index
    %54 = vector.load %arg5[%c0_28, %c7, %c0_29, %c0_30] : memref<4x8x8x8xf32, #tpu.memory_space<vmem>>, vector<1x1x8x8xf32>
    %55 = vector.shape_cast %54 : vector<1x1x8x8xf32> to vector<8x8xf32>
    %56 = vector.broadcast %53 : vector<8x1xf32> to vector<8x8xf32>
    %57 = arith.mulf %56, %55 : vector<8x8xf32>
    %58 = arith.addf %52, %57 : vector<8x8xf32>
    %cst_31 = arith.constant dense<0xFF800000> : vector<8xf32>
    %59 = vector.multi_reduction <maximumf>, %58, %cst_31 [1] : vector<8x8xf32> to vector<8xf32>
    %60 = vector.shape_cast %59 : vector<8xf32> to vector<8x1xf32>
    %61 = vector.broadcast %60 : vector<8x1xf32> to vector<8x8xf32>
    %62 = arith.subf %58, %61 : vector<8x8xf32>
    %63 = math.exp %62 : vector<8x8xf32>
    %cst_32 = arith.constant dense<0.000000e+00> : vector<8xf32>
    %64 = vector.multi_reduction <add>, %63, %cst_32 [1] : vector<8x8xf32> to vector<8xf32>
    %65 = vector.shape_cast %64 : vector<8xf32> to vector<8x1xf32>
    %66 = tpu.reciprocal %65 {approx = true} : vector<8x1xf32> -> vector<8x1xf32>
    %67 = vector.broadcast %66 : vector<8x1xf32> to vector<8x8xf32>
    %68 = arith.mulf %63, %67 : vector<8x8xf32>
    %69 = arith.truncf %68 : vector<8x8xf32> to vector<8x8xbf16>
    %c0_33 = arith.constant 0 : index
    %c0_34 = arith.constant 0 : index
    %c0_35 = arith.constant 0 : index
    %c0_36 = arith.constant 0 : index
    %70 = vector.load %arg3[%c0_33, %c0_34, %c0_35, %c0_36] : memref<1x4x8x8xbf16, #tpu.memory_space<vmem>>, vector<1x1x8x8xbf16>
    %71 = vector.shape_cast %70 : vector<1x1x8x8xbf16> to vector<8x8xbf16>
    %cst_37 = arith.constant dense<0.000000e+00> : vector<8x8xf32>
    %72 = tpu.matmul %69, %71, %cst_37 {dimension_numbers = #tpu.dot_dimension_numbers<[1], [0], [0], [1], [0, 0, 1, 1], [], []>} : vector<8x8xbf16>, vector<8x8xbf16>, vector<8x8xf32> -> vector<8x8xf32>
    %c0_38 = arith.constant 0 : index
    %c0_39 = arith.constant 0 : index
    %c0_40 = arith.constant 0 : index
    %73 = vector.load %arg6[%c0_38, %c0_39, %c0_40] : memref<4x1x8xf32, #tpu.memory_space<vmem>>, vector<1x1x8xf32>
    %74 = vector.shape_cast %73 : vector<1x1x8xf32> to vector<1x8xf32>
    %75 = vector.broadcast %74 : vector<1x8xf32> to vector<8x8xf32>
    %76 = arith.mulf %72, %75 : vector<8x8xf32>
    %c0_41 = arith.constant 0 : index
    %c0_42 = arith.constant 0 : index
    %77 = vector.load %arg10[%c0_41, %c0_42] : memref<8x32xf32, #tpu.memory_space<vmem>>, vector<8x8xf32>
    tpu.vector_store %arg10[%c0_41, %c0_42], %76 {strides = array<i32>} : memref<8x32xf32, #tpu.memory_space<vmem>>, vector<8x8xf32>,
    %78 = vector.extract_strided_slice %11 {offsets = [0, 8], sizes = [8, 1], strides = [1, 1]} : vector<8x32xf32> to vector<8x1xf32>
    %c1_43 = arith.constant 1 : index
    %c0_44 = arith.constant 0 : index
    %c0_45 = arith.constant 0 : index
    %c0_46 = arith.constant 0 : index
    %79 = vector.load %arg5[%c1_43, %c0_44, %c0_45, %c0_46] : memref<4x8x8x8xf32, #tpu.memory_space<vmem>>, vector<1x1x8x8xf32>
    %80 = vector.shape_cast %79 : vector<1x1x8x8xf32> to vector<8x8xf32>
    %81 = vector.broadcast %78 : vector<8x1xf32> to vector<8x8xf32>
    %82 = arith.mulf %81, %80 : vector<8x8xf32>
    %83 = vector.extract_strided_slice %11 {offsets = [0, 9], sizes = [8, 1], strides = [1, 1]} : vector<8x32xf32> to vector<8x1xf32>
    %c1_47 = arith.constant 1 : index
    %c1_48 = arith.constant 1 : index
    %c0_49 = arith.constant 0 : index
    %c0_50 = arith.constant 0 : index
    %84 = vector.load %arg5[%c1_47, %c1_48, %c0_49, %c0_50] : memref<4x8x8x8xf32, #tpu.memory_space<vmem>>, vector<1x1x8x8xf32>
    %85 = vector.shape_cast %84 : vector<1x1x8x8xf32> to vector<8x8xf32>
    %86 = vector.broadcast %83 : vector<8x1xf32> to vector<8x8xf32>
    %87 = arith.mulf %86, %85 : vector<8x8xf32>
    %88 = arith.addf %82, %87 : vector<8x8xf32>
    %89 = vector.extract_strided_slice %11 {offsets = [0, 10], sizes = [8, 1], strides = [1, 1]} : vector<8x32xf32> to vector<8x1xf32>
    %c1_51 = arith.constant 1 : index
    %c2_52 = arith.constant 2 : index
    %c0_53 = arith.constant 0 : index
    %c0_54 = arith.constant 0 : index
    %90 = vector.load %arg5[%c1_51, %c2_52, %c0_53, %c0_54] : memref<4x8x8x8xf32, #tpu.memory_space<vmem>>, vector<1x1x8x8xf32>
    %91 = vector.shape_cast %90 : vector<1x1x8x8xf32> to vector<8x8xf32>
    %92 = vector.broadcast %89 : vector<8x1xf32> to vector<8x8xf32>
    %93 = arith.mulf %92, %91 : vector<8x8xf32>
    %94 = arith.addf %88, %93 : vector<8x8xf32>
    %95 = vector.extract_strided_slice %11 {offsets = [0, 11], sizes = [8, 1], strides = [1, 1]} : vector<8x32xf32> to vector<8x1xf32>
    %c1_55 = arith.constant 1 : index
    %c3_56 = arith.constant 3 : index
    %c0_57 = arith.constant 0 : index
    %c0_58 = arith.constant 0 : index
    %96 = vector.load %arg5[%c1_55, %c3_56, %c0_57, %c0_58] : memref<4x8x8x8xf32, #tpu.memory_space<vmem>>, vector<1x1x8x8xf32>
    %97 = vector.shape_cast %96 : vector<1x1x8x8xf32> to vector<8x8xf32>
    %98 = vector.broadcast %95 : vector<8x1xf32> to vector<8x8xf32>
    %99 = arith.mulf %98, %97 : vector<8x8xf32>
    %100 = arith.addf %94, %99 : vector<8x8xf32>
    %101 = vector.extract_strided_slice %11 {offsets = [0, 12], sizes = [8, 1], strides = [1, 1]} : vector<8x32xf32> to vector<8x1xf32>
    %c1_59 = arith.constant 1 : index
    %c4_60 = arith.constant 4 : index
    %c0_61 = arith.constant 0 : index
    %c0_62 = arith.constant 0 : index
    %102 = vector.load %arg5[%c1_59, %c4_60, %c0_61, %c0_62] : memref<4x8x8x8xf32, #tpu.memory_space<vmem>>, vector<1x1x8x8xf32>
    %103 = vector.shape_cast %102 : vector<1x1x8x8xf32> to vector<8x8xf32>
    %104 = vector.broadcast %101 : vector<8x1xf32> to vector<8x8xf32>
    %105 = arith.mulf %104, %103 : vector<8x8xf32>
    %106 = arith.addf %100, %105 : vector<8x8xf32>
    %107 = vector.extract_strided_slice %11 {offsets = [0, 13], sizes = [8, 1], strides = [1, 1]} : vector<8x32xf32> to vector<8x1xf32>
    %c1_63 = arith.constant 1 : index
    %c5_64 = arith.constant 5 : index
    %c0_65 = arith.constant 0 : index
    %c0_66 = arith.constant 0 : index
    %108 = vector.load %arg5[%c1_63, %c5_64, %c0_65, %c0_66] : memref<4x8x8x8xf32, #tpu.memory_space<vmem>>, vector<1x1x8x8xf32>
    %109 = vector.shape_cast %108 : vector<1x1x8x8xf32> to vector<8x8xf32>
    %110 = vector.broadcast %107 : vector<8x1xf32> to vector<8x8xf32>
    %111 = arith.mulf %110, %109 : vector<8x8xf32>
    %112 = arith.addf %106, %111 : vector<8x8xf32>
    %113 = vector.extract_strided_slice %11 {offsets = [0, 14], sizes = [8, 1], strides = [1, 1]} : vector<8x32xf32> to vector<8x1xf32>
    %c1_67 = arith.constant 1 : index
    %c6_68 = arith.constant 6 : index
    %c0_69 = arith.constant 0 : index
    %c0_70 = arith.constant 0 : index
    %114 = vector.load %arg5[%c1_67, %c6_68, %c0_69, %c0_70] : memref<4x8x8x8xf32, #tpu.memory_space<vmem>>, vector<1x1x8x8xf32>
    %115 = vector.shape_cast %114 : vector<1x1x8x8xf32> to vector<8x8xf32>
    %116 = vector.broadcast %113 : vector<8x1xf32> to vector<8x8xf32>
    %117 = arith.mulf %116, %115 : vector<8x8xf32>
    %118 = arith.addf %112, %117 : vector<8x8xf32>
    %119 = vector.extract_strided_slice %11 {offsets = [0, 15], sizes = [8, 1], strides = [1, 1]} : vector<8x32xf32> to vector<8x1xf32>
    %c1_71 = arith.constant 1 : index
    %c7_72 = arith.constant 7 : index
    %c0_73 = arith.constant 0 : index
    %c0_74 = arith.constant 0 : index
    %120 = vector.load %arg5[%c1_71, %c7_72, %c0_73, %c0_74] : memref<4x8x8x8xf32, #tpu.memory_space<vmem>>, vector<1x1x8x8xf32>
    %121 = vector.shape_cast %120 : vector<1x1x8x8xf32> to vector<8x8xf32>
    %122 = vector.broadcast %119 : vector<8x1xf32> to vector<8x8xf32>
    %123 = arith.mulf %122, %121 : vector<8x8xf32>
    %124 = arith.addf %118, %123 : vector<8x8xf32>
    %cst_75 = arith.constant dense<0xFF800000> : vector<8xf32>
    %125 = vector.multi_reduction <maximumf>, %124, %cst_75 [1] : vector<8x8xf32> to vector<8xf32>
    %126 = vector.shape_cast %125 : vector<8xf32> to vector<8x1xf32>
    %127 = vector.broadcast %126 : vector<8x1xf32> to vector<8x8xf32>
    %128 = arith.subf %124, %127 : vector<8x8xf32>
    %129 = math.exp %128 : vector<8x8xf32>
    %cst_76 = arith.constant dense<0.000000e+00> : vector<8xf32>
    %130 = vector.multi_reduction <add>, %129, %cst_76 [1] : vector<8x8xf32> to vector<8xf32>
    %131 = vector.shape_cast %130 : vector<8xf32> to vector<8x1xf32>
    %132 = tpu.reciprocal %131 {approx = true} : vector<8x1xf32> -> vector<8x1xf32>
    %133 = vector.broadcast %132 : vector<8x1xf32> to vector<8x8xf32>
    %134 = arith.mulf %129, %133 : vector<8x8xf32>
    %135 = arith.truncf %134 : vector<8x8xf32> to vector<8x8xbf16>
    %c0_77 = arith.constant 0 : index
    %c1_78 = arith.constant 1 : index
    %c0_79 = arith.constant 0 : index
    %c0_80 = arith.constant 0 : index
    %136 = vector.load %arg3[%c0_77, %c1_78, %c0_79, %c0_80] : memref<1x4x8x8xbf16, #tpu.memory_space<vmem>>, vector<1x1x8x8xbf16>
    %137 = vector.shape_cast %136 : vector<1x1x8x8xbf16> to vector<8x8xbf16>
    %cst_81 = arith.constant dense<0.000000e+00> : vector<8x8xf32>
    %138 = tpu.matmul %135, %137, %cst_81 {dimension_numbers = #tpu.dot_dimension_numbers<[1], [0], [0], [1], [0, 0, 1, 1], [], []>} : vector<8x8xbf16>, vector<8x8xbf16>, vector<8x8xf32> -> vector<8x8xf32>
    %c1_82 = arith.constant 1 : index
    %c0_83 = arith.constant 0 : index
    %c0_84 = arith.constant 0 : index
    %139 = vector.load %arg6[%c1_82, %c0_83, %c0_84] : memref<4x1x8xf32, #tpu.memory_space<vmem>>, vector<1x1x8xf32>
    %140 = vector.shape_cast %139 : vector<1x1x8xf32> to vector<1x8xf32>
    %141 = vector.broadcast %140 : vector<1x8xf32> to vector<8x8xf32>
    %142 = arith.mulf %138, %141 : vector<8x8xf32>
    %c0_85 = arith.constant 0 : index
    %c8 = arith.constant 8 : index
    %143 = vector.load %arg10[%c0_85, %c8] : memref<8x32xf32, #tpu.memory_space<vmem>>, vector<8x8xf32>
    tpu.vector_store %arg10[%c0_85, %c8], %142 {strides = array<i32>} : memref<8x32xf32, #tpu.memory_space<vmem>>, vector<8x8xf32>,
    %144 = vector.extract_strided_slice %11 {offsets = [0, 16], sizes = [8, 1], strides = [1, 1]} : vector<8x32xf32> to vector<8x1xf32>
    %c2_86 = arith.constant 2 : index
    %c0_87 = arith.constant 0 : index
    %c0_88 = arith.constant 0 : index
    %c0_89 = arith.constant 0 : index
    %145 = vector.load %arg5[%c2_86, %c0_87, %c0_88, %c0_89] : memref<4x8x8x8xf32, #tpu.memory_space<vmem>>, vector<1x1x8x8xf32>
    %146 = vector.shape_cast %145 : vector<1x1x8x8xf32> to vector<8x8xf32>
    %147 = vector.broadcast %144 : vector<8x1xf32> to vector<8x8xf32>
    %148 = arith.mulf %147, %146 : vector<8x8xf32>
    %149 = vector.extract_strided_slice %11 {offsets = [0, 17], sizes = [8, 1], strides = [1, 1]} : vector<8x32xf32> to vector<8x1xf32>
    %c2_90 = arith.constant 2 : index
    %c1_91 = arith.constant 1 : index
    %c0_92 = arith.constant 0 : index
    %c0_93 = arith.constant 0 : index
    %150 = vector.load %arg5[%c2_90, %c1_91, %c0_92, %c0_93] : memref<4x8x8x8xf32, #tpu.memory_space<vmem>>, vector<1x1x8x8xf32>
    %151 = vector.shape_cast %150 : vector<1x1x8x8xf32> to vector<8x8xf32>
    %152 = vector.broadcast %149 : vector<8x1xf32> to vector<8x8xf32>
    %153 = arith.mulf %152, %151 : vector<8x8xf32>
    %154 = arith.addf %148, %153 : vector<8x8xf32>
    %155 = vector.extract_strided_slice %11 {offsets = [0, 18], sizes = [8, 1], strides = [1, 1]} : vector<8x32xf32> to vector<8x1xf32>
    %c2_94 = arith.constant 2 : index
    %c2_95 = arith.constant 2 : index
    %c0_96 = arith.constant 0 : index
    %c0_97 = arith.constant 0 : index
    %156 = vector.load %arg5[%c2_94, %c2_95, %c0_96, %c0_97] : memref<4x8x8x8xf32, #tpu.memory_space<vmem>>, vector<1x1x8x8xf32>
    %157 = vector.shape_cast %156 : vector<1x1x8x8xf32> to vector<8x8xf32>
    %158 = vector.broadcast %155 : vector<8x1xf32> to vector<8x8xf32>
    %159 = arith.mulf %158, %157 : vector<8x8xf32>
    %160 = arith.addf %154, %159 : vector<8x8xf32>
    %161 = vector.extract_strided_slice %11 {offsets = [0, 19], sizes = [8, 1], strides = [1, 1]} : vector<8x32xf32> to vector<8x1xf32>
    %c2_98 = arith.constant 2 : index
    %c3_99 = arith.constant 3 : index
    %c0_100 = arith.constant 0 : index
    %c0_101 = arith.constant 0 : index
    %162 = vector.load %arg5[%c2_98, %c3_99, %c0_100, %c0_101] : memref<4x8x8x8xf32, #tpu.memory_space<vmem>>, vector<1x1x8x8xf32>
    %163 = vector.shape_cast %162 : vector<1x1x8x8xf32> to vector<8x8xf32>
    %164 = vector.broadcast %161 : vector<8x1xf32> to vector<8x8xf32>
    %165 = arith.mulf %164, %163 : vector<8x8xf32>
    %166 = arith.addf %160, %165 : vector<8x8xf32>
    %167 = vector.extract_strided_slice %11 {offsets = [0, 20], sizes = [8, 1], strides = [1, 1]} : vector<8x32xf32> to vector<8x1xf32>
    %c2_102 = arith.constant 2 : index
    %c4_103 = arith.constant 4 : index
    %c0_104 = arith.constant 0 : index
    %c0_105 = arith.constant 0 : index
    %168 = vector.load %arg5[%c2_102, %c4_103, %c0_104, %c0_105] : memref<4x8x8x8xf32, #tpu.memory_space<vmem>>, vector<1x1x8x8xf32>
    %169 = vector.shape_cast %168 : vector<1x1x8x8xf32> to vector<8x8xf32>
    %170 = vector.broadcast %167 : vector<8x1xf32> to vector<8x8xf32>
    %171 = arith.mulf %170, %169 : vector<8x8xf32>
    %172 = arith.addf %166, %171 : vector<8x8xf32>
    %173 = vector.extract_strided_slice %11 {offsets = [0, 21], sizes = [8, 1], strides = [1, 1]} : vector<8x32xf32> to vector<8x1xf32>
    %c2_106 = arith.constant 2 : index
    %c5_107 = arith.constant 5 : index
    %c0_108 = arith.constant 0 : index
    %c0_109 = arith.constant 0 : index
    %174 = vector.load %arg5[%c2_106, %c5_107, %c0_108, %c0_109] : memref<4x8x8x8xf32, #tpu.memory_space<vmem>>, vector<1x1x8x8xf32>
    %175 = vector.shape_cast %174 : vector<1x1x8x8xf32> to vector<8x8xf32>
    %176 = vector.broadcast %173 : vector<8x1xf32> to vector<8x8xf32>
    %177 = arith.mulf %176, %175 : vector<8x8xf32>
    %178 = arith.addf %172, %177 : vector<8x8xf32>
    %179 = vector.extract_strided_slice %11 {offsets = [0, 22], sizes = [8, 1], strides = [1, 1]} : vector<8x32xf32> to vector<8x1xf32>
    %c2_110 = arith.constant 2 : index
    %c6_111 = arith.constant 6 : index
    %c0_112 = arith.constant 0 : index
    %c0_113 = arith.constant 0 : index
    %180 = vector.load %arg5[%c2_110, %c6_111, %c0_112, %c0_113] : memref<4x8x8x8xf32, #tpu.memory_space<vmem>>, vector<1x1x8x8xf32>
    %181 = vector.shape_cast %180 : vector<1x1x8x8xf32> to vector<8x8xf32>
    %182 = vector.broadcast %179 : vector<8x1xf32> to vector<8x8xf32>
    %183 = arith.mulf %182, %181 : vector<8x8xf32>
    %184 = arith.addf %178, %183 : vector<8x8xf32>
    %185 = vector.extract_strided_slice %11 {offsets = [0, 23], sizes = [8, 1], strides = [1, 1]} : vector<8x32xf32> to vector<8x1xf32>
    %c2_114 = arith.constant 2 : index
    %c7_115 = arith.constant 7 : index
    %c0_116 = arith.constant 0 : index
    %c0_117 = arith.constant 0 : index
    %186 = vector.load %arg5[%c2_114, %c7_115, %c0_116, %c0_117] : memref<4x8x8x8xf32, #tpu.memory_space<vmem>>, vector<1x1x8x8xf32>
    %187 = vector.shape_cast %186 : vector<1x1x8x8xf32> to vector<8x8xf32>
    %188 = vector.broadcast %185 : vector<8x1xf32> to vector<8x8xf32>
    %189 = arith.mulf %188, %187 : vector<8x8xf32>
    %190 = arith.addf %184, %189 : vector<8x8xf32>
    %cst_118 = arith.constant dense<0xFF800000> : vector<8xf32>
    %191 = vector.multi_reduction <maximumf>, %190, %cst_118 [1] : vector<8x8xf32> to vector<8xf32>
    %192 = vector.shape_cast %191 : vector<8xf32> to vector<8x1xf32>
    %193 = vector.broadcast %192 : vector<8x1xf32> to vector<8x8xf32>
    %194 = arith.subf %190, %193 : vector<8x8xf32>
    %195 = math.exp %194 : vector<8x8xf32>
    %cst_119 = arith.constant dense<0.000000e+00> : vector<8xf32>
    %196 = vector.multi_reduction <add>, %195, %cst_119 [1] : vector<8x8xf32> to vector<8xf32>
    %197 = vector.shape_cast %196 : vector<8xf32> to vector<8x1xf32>
    %198 = tpu.reciprocal %197 {approx = true} : vector<8x1xf32> -> vector<8x1xf32>
    %199 = vector.broadcast %198 : vector<8x1xf32> to vector<8x8xf32>
    %200 = arith.mulf %195, %199 : vector<8x8xf32>
    %201 = arith.truncf %200 : vector<8x8xf32> to vector<8x8xbf16>
    %c0_120 = arith.constant 0 : index
    %c2_121 = arith.constant 2 : index
    %c0_122 = arith.constant 0 : index
    %c0_123 = arith.constant 0 : index
    %202 = vector.load %arg3[%c0_120, %c2_121, %c0_122, %c0_123] : memref<1x4x8x8xbf16, #tpu.memory_space<vmem>>, vector<1x1x8x8xbf16>
    %203 = vector.shape_cast %202 : vector<1x1x8x8xbf16> to vector<8x8xbf16>
    %cst_124 = arith.constant dense<0.000000e+00> : vector<8x8xf32>
    %204 = tpu.matmul %201, %203, %cst_124 {dimension_numbers = #tpu.dot_dimension_numbers<[1], [0], [0], [1], [0, 0, 1, 1], [], []>} : vector<8x8xbf16>, vector<8x8xbf16>, vector<8x8xf32> -> vector<8x8xf32>
    %c2_125 = arith.constant 2 : index
    %c0_126 = arith.constant 0 : index
    %c0_127 = arith.constant 0 : index
    %205 = vector.load %arg6[%c2_125, %c0_126, %c0_127] : memref<4x1x8xf32, #tpu.memory_space<vmem>>, vector<1x1x8xf32>
    %206 = vector.shape_cast %205 : vector<1x1x8xf32> to vector<1x8xf32>
    %207 = vector.broadcast %206 : vector<1x8xf32> to vector<8x8xf32>
    %208 = arith.mulf %204, %207 : vector<8x8xf32>
    %c0_128 = arith.constant 0 : index
    %c16 = arith.constant 16 : index
    %209 = vector.load %arg10[%c0_128, %c16] : memref<8x32xf32, #tpu.memory_space<vmem>>, vector<8x8xf32>
    tpu.vector_store %arg10[%c0_128, %c16], %208 {strides = array<i32>} : memref<8x32xf32, #tpu.memory_space<vmem>>, vector<8x8xf32>,
    %210 = vector.extract_strided_slice %11 {offsets = [0, 24], sizes = [8, 1], strides = [1, 1]} : vector<8x32xf32> to vector<8x1xf32>
    %c3_129 = arith.constant 3 : index
    %c0_130 = arith.constant 0 : index
    %c0_131 = arith.constant 0 : index
    %c0_132 = arith.constant 0 : index
    %211 = vector.load %arg5[%c3_129, %c0_130, %c0_131, %c0_132] : memref<4x8x8x8xf32, #tpu.memory_space<vmem>>, vector<1x1x8x8xf32>
    %212 = vector.shape_cast %211 : vector<1x1x8x8xf32> to vector<8x8xf32>
    %213 = vector.broadcast %210 : vector<8x1xf32> to vector<8x8xf32>
    %214 = arith.mulf %213, %212 : vector<8x8xf32>
    %215 = vector.extract_strided_slice %11 {offsets = [0, 25], sizes = [8, 1], strides = [1, 1]} : vector<8x32xf32> to vector<8x1xf32>
    %c3_133 = arith.constant 3 : index
    %c1_134 = arith.constant 1 : index
    %c0_135 = arith.constant 0 : index
    %c0_136 = arith.constant 0 : index
    %216 = vector.load %arg5[%c3_133, %c1_134, %c0_135, %c0_136] : memref<4x8x8x8xf32, #tpu.memory_space<vmem>>, vector<1x1x8x8xf32>
    %217 = vector.shape_cast %216 : vector<1x1x8x8xf32> to vector<8x8xf32>
    %218 = vector.broadcast %215 : vector<8x1xf32> to vector<8x8xf32>
    %219 = arith.mulf %218, %217 : vector<8x8xf32>
    %220 = arith.addf %214, %219 : vector<8x8xf32>
    %221 = vector.extract_strided_slice %11 {offsets = [0, 26], sizes = [8, 1], strides = [1, 1]} : vector<8x32xf32> to vector<8x1xf32>
    %c3_137 = arith.constant 3 : index
    %c2_138 = arith.constant 2 : index
    %c0_139 = arith.constant 0 : index
    %c0_140 = arith.constant 0 : index
    %222 = vector.load %arg5[%c3_137, %c2_138, %c0_139, %c0_140] : memref<4x8x8x8xf32, #tpu.memory_space<vmem>>, vector<1x1x8x8xf32>
    %223 = vector.shape_cast %222 : vector<1x1x8x8xf32> to vector<8x8xf32>
    %224 = vector.broadcast %221 : vector<8x1xf32> to vector<8x8xf32>
    %225 = arith.mulf %224, %223 : vector<8x8xf32>
    %226 = arith.addf %220, %225 : vector<8x8xf32>
    %227 = vector.extract_strided_slice %11 {offsets = [0, 27], sizes = [8, 1], strides = [1, 1]} : vector<8x32xf32> to vector<8x1xf32>
    %c3_141 = arith.constant 3 : index
    %c3_142 = arith.constant 3 : index
    %c0_143 = arith.constant 0 : index
    %c0_144 = arith.constant 0 : index
    %228 = vector.load %arg5[%c3_141, %c3_142, %c0_143, %c0_144] : memref<4x8x8x8xf32, #tpu.memory_space<vmem>>, vector<1x1x8x8xf32>
    %229 = vector.shape_cast %228 : vector<1x1x8x8xf32> to vector<8x8xf32>
    %230 = vector.broadcast %227 : vector<8x1xf32> to vector<8x8xf32>
    %231 = arith.mulf %230, %229 : vector<8x8xf32>
    %232 = arith.addf %226, %231 : vector<8x8xf32>
    %233 = vector.extract_strided_slice %11 {offsets = [0, 28], sizes = [8, 1], strides = [1, 1]} : vector<8x32xf32> to vector<8x1xf32>
    %c3_145 = arith.constant 3 : index
    %c4_146 = arith.constant 4 : index
    %c0_147 = arith.constant 0 : index
    %c0_148 = arith.constant 0 : index
    %234 = vector.load %arg5[%c3_145, %c4_146, %c0_147, %c0_148] : memref<4x8x8x8xf32, #tpu.memory_space<vmem>>, vector<1x1x8x8xf32>
    %235 = vector.shape_cast %234 : vector<1x1x8x8xf32> to vector<8x8xf32>
    %236 = vector.broadcast %233 : vector<8x1xf32> to vector<8x8xf32>
    %237 = arith.mulf %236, %235 : vector<8x8xf32>
    %238 = arith.addf %232, %237 : vector<8x8xf32>
    %239 = vector.extract_strided_slice %11 {offsets = [0, 29], sizes = [8, 1], strides = [1, 1]} : vector<8x32xf32> to vector<8x1xf32>
    %c3_149 = arith.constant 3 : index
    %c5_150 = arith.constant 5 : index
    %c0_151 = arith.constant 0 : index
    %c0_152 = arith.constant 0 : index
    %240 = vector.load %arg5[%c3_149, %c5_150, %c0_151, %c0_152] : memref<4x8x8x8xf32, #tpu.memory_space<vmem>>, vector<1x1x8x8xf32>
    %241 = vector.shape_cast %240 : vector<1x1x8x8xf32> to vector<8x8xf32>
    %242 = vector.broadcast %239 : vector<8x1xf32> to vector<8x8xf32>
    %243 = arith.mulf %242, %241 : vector<8x8xf32>
    %244 = arith.addf %238, %243 : vector<8x8xf32>
    %245 = vector.extract_strided_slice %11 {offsets = [0, 30], sizes = [8, 1], strides = [1, 1]} : vector<8x32xf32> to vector<8x1xf32>
    %c3_153 = arith.constant 3 : index
    %c6_154 = arith.constant 6 : index
    %c0_155 = arith.constant 0 : index
    %c0_156 = arith.constant 0 : index
    %246 = vector.load %arg5[%c3_153, %c6_154, %c0_155, %c0_156] : memref<4x8x8x8xf32, #tpu.memory_space<vmem>>, vector<1x1x8x8xf32>
    %247 = vector.shape_cast %246 : vector<1x1x8x8xf32> to vector<8x8xf32>
    %248 = vector.broadcast %245 : vector<8x1xf32> to vector<8x8xf32>
    %249 = arith.mulf %248, %247 : vector<8x8xf32>
    %250 = arith.addf %244, %249 : vector<8x8xf32>
    %251 = vector.extract_strided_slice %11 {offsets = [0, 31], sizes = [8, 1], strides = [1, 1]} : vector<8x32xf32> to vector<8x1xf32>
    %c3_157 = arith.constant 3 : index
    %c7_158 = arith.constant 7 : index
    %c0_159 = arith.constant 0 : index
    %c0_160 = arith.constant 0 : index
    %252 = vector.load %arg5[%c3_157, %c7_158, %c0_159, %c0_160] : memref<4x8x8x8xf32, #tpu.memory_space<vmem>>, vector<1x1x8x8xf32>
    %253 = vector.shape_cast %252 : vector<1x1x8x8xf32> to vector<8x8xf32>
    %254 = vector.broadcast %251 : vector<8x1xf32> to vector<8x8xf32>
    %255 = arith.mulf %254, %253 : vector<8x8xf32>
    %256 = arith.addf %250, %255 : vector<8x8xf32>
    %cst_161 = arith.constant dense<0xFF800000> : vector<8xf32>
    %257 = vector.multi_reduction <maximumf>, %256, %cst_161 [1] : vector<8x8xf32> to vector<8xf32>
    %258 = vector.shape_cast %257 : vector<8xf32> to vector<8x1xf32>
    %259 = vector.broadcast %258 : vector<8x1xf32> to vector<8x8xf32>
    %260 = arith.subf %256, %259 : vector<8x8xf32>
    %261 = math.exp %260 : vector<8x8xf32>
    %cst_162 = arith.constant dense<0.000000e+00> : vector<8xf32>
    %262 = vector.multi_reduction <add>, %261, %cst_162 [1] : vector<8x8xf32> to vector<8xf32>
    %263 = vector.shape_cast %262 : vector<8xf32> to vector<8x1xf32>
    %264 = tpu.reciprocal %263 {approx = true} : vector<8x1xf32> -> vector<8x1xf32>
    %265 = vector.broadcast %264 : vector<8x1xf32> to vector<8x8xf32>
    %266 = arith.mulf %261, %265 : vector<8x8xf32>
    %267 = arith.truncf %266 : vector<8x8xf32> to vector<8x8xbf16>
    %c0_163 = arith.constant 0 : index
    %c3_164 = arith.constant 3 : index
    %c0_165 = arith.constant 0 : index
    %c0_166 = arith.constant 0 : index
    %268 = vector.load %arg3[%c0_163, %c3_164, %c0_165, %c0_166] : memref<1x4x8x8xbf16, #tpu.memory_space<vmem>>, vector<1x1x8x8xbf16>
    %269 = vector.shape_cast %268 : vector<1x1x8x8xbf16> to vector<8x8xbf16>
    %cst_167 = arith.constant dense<0.000000e+00> : vector<8x8xf32>
    %270 = tpu.matmul %267, %269, %cst_167 {dimension_numbers = #tpu.dot_dimension_numbers<[1], [0], [0], [1], [0, 0, 1, 1], [], []>} : vector<8x8xbf16>, vector<8x8xbf16>, vector<8x8xf32> -> vector<8x8xf32>
    %c3_168 = arith.constant 3 : index
    %c0_169 = arith.constant 0 : index
    %c0_170 = arith.constant 0 : index
    %271 = vector.load %arg6[%c3_168, %c0_169, %c0_170] : memref<4x1x8xf32, #tpu.memory_space<vmem>>, vector<1x1x8xf32>
    %272 = vector.shape_cast %271 : vector<1x1x8xf32> to vector<1x8xf32>
    %273 = vector.broadcast %272 : vector<1x8xf32> to vector<8x8xf32>
    %274 = arith.mulf %270, %273 : vector<8x8xf32>
    %c0_171 = arith.constant 0 : index
    %c24 = arith.constant 24 : index
    %275 = vector.load %arg10[%c0_171, %c24] : memref<8x32xf32, #tpu.memory_space<vmem>>, vector<8x8xf32>
    tpu.vector_store %arg10[%c0_171, %c24], %274 {strides = array<i32>} : memref<8x32xf32, #tpu.memory_space<vmem>>, vector<8x8xf32>,
    %c0_172 = arith.constant 0 : index
    %c0_173 = arith.constant 0 : index
    %276 = vector.load %arg10[%c0_172, %c0_173] : memref<8x32xf32, #tpu.memory_space<vmem>>, vector<8x32xf32>
    %277 = arith.truncf %276 : vector<8x32xf32> to vector<8x32xbf16>
    %c0_174 = arith.constant 0 : index
    %c0_175 = arith.constant 0 : index
    %278 = vector.load %arg7[%c0_174, %c0_175] : memref<32x32xbf16, #tpu.memory_space<vmem>>, vector<32x32xbf16>
    %cst_176 = arith.constant dense<0.000000e+00> : vector<8x32xf32>
    %279 = tpu.matmul %277, %278, %cst_176 {dimension_numbers = #tpu.dot_dimension_numbers<[1], [0], [0], [1], [0, 0, 1, 1], [], []>} : vector<8x32xbf16>, vector<32x32xbf16>, vector<8x32xf32> -> vector<8x32xf32>
    %c0_177 = arith.constant 0 : index
    %c0_178 = arith.constant 0 : index
    %280 = vector.load %arg8[%c0_177, %c0_178] : memref<1x32xf32, #tpu.memory_space<vmem>>, vector<1x32xf32>
    %281 = vector.broadcast %280 : vector<1x32xf32> to vector<8x32xf32>
    %282 = arith.addf %279, %281 : vector<8x32xf32>
    %c0_179 = arith.constant 0 : index
    %c0_180 = arith.constant 0 : index
    %c0_181 = arith.constant 0 : index
    %283 = vector.load %arg9[%c0_179, %c0_180, %c0_181] : memref<1x8x32xf32, #tpu.memory_space<vmem>>, vector<1x8x32xf32>
    %284 = vector.shape_cast %283 : vector<1x8x32xf32> to vector<8x32xf32>
    %285 = vector.shape_cast %282 : vector<8x32xf32> to vector<1x8x32xf32>
    tpu.vector_store %arg9[%c0_179, %c0_180, %c0_181], %285 {strides = array<i32>} : memref<1x8x32xf32, #tpu.memory_space<vmem>>, vector<1x8x32xf32>,
    return
  }
  func.func @transform_0(%arg0: i32, %arg1: i32) -> (i32, i32, i32) {
    %c0_i32 = arith.constant 0 : i32
    %c0_i32_0 = arith.constant 0 : i32
    return %arg0, %arg1, %c0_i32 : i32, i32, i32
  }
  func.func @transform_1(%arg0: i32, %arg1: i32) -> (i32, i32, i32, i32) {
    %c0_i32 = arith.constant 0 : i32
    %c0_i32_0 = arith.constant 0 : i32
    %c0_i32_1 = arith.constant 0 : i32
    %c0_i32_2 = arith.constant 0 : i32
    return %arg0, %c0_i32, %c0_i32_0, %c0_i32_1 : i32, i32, i32, i32
  }
  func.func @transform_2(%arg0: i32, %arg1: i32) -> (i32, i32) {
    %c0_i32 = arith.constant 0 : i32
    %c0_i32_0 = arith.constant 0 : i32
    return %arg1, %c0_i32 : i32, i32
  }
  func.func @transform_3(%arg0: i32, %arg1: i32) -> (i32, i32, i32, i32) {
    %c0_i32 = arith.constant 0 : i32
    %c0_i32_0 = arith.constant 0 : i32
    %c0_i32_1 = arith.constant 0 : i32
    %c0_i32_2 = arith.constant 0 : i32
    return %c0_i32, %c0_i32_0, %arg1, %c0_i32_1 : i32, i32, i32, i32
  }
  func.func @transform_4(%arg0: i32, %arg1: i32) -> (i32, i32, i32) {
    %c0_i32 = arith.constant 0 : i32
    %c0_i32_0 = arith.constant 0 : i32
    %c0_i32_1 = arith.constant 0 : i32
    %c0_i32_2 = arith.constant 0 : i32
    return %c0_i32, %c0_i32_0, %c0_i32_1 : i32, i32, i32
  }
  func.func @transform_5(%arg0: i32, %arg1: i32) -> (i32, i32) {
    %c0_i32 = arith.constant 0 : i32
    %c0_i32_0 = arith.constant 0 : i32
    %c0_i32_1 = arith.constant 0 : i32
    return %c0_i32, %c0_i32_0 : i32, i32
  }
  func.func @transform_6(%arg0: i32, %arg1: i32) -> (i32, i32) {
    %c0_i32 = arith.constant 0 : i32
    %c0_i32_0 = arith.constant 0 : i32
    %c0_i32_1 = arith.constant 0 : i32
    return %c0_i32, %c0_i32_0 : i32, i32
  }
  func.func @transform_7(%arg0: i32, %arg1: i32) -> (i32, i32, i32) {
    %c0_i32 = arith.constant 0 : i32
    %c0_i32_0 = arith.constant 0 : i32
    return %arg0, %arg1, %c0_i32 : i32, i32, i32
  }
}

</mosaic_0001>

<bundles_post_ra>
// kernel: tpu_custom_call.1
= control target key start
LH: loop header
LB: loop body
LE: loop exit
PB: predicated region body
PF: predicated region fallthrough
CT: control target
= control target key end

     0   :  { %s2201_s0 = inlined_call_operand.hbm [shape: f32[2,8,32], index: 0, kind: input, shape index: {}]   ;;  %s2202_s1 = inlined_call_operand.hbm [shape: bf16[2,4,8,8], index: 1, kind: input, shape index: {}]   ;;  %s2203_s2 = inlined_call_operand.hbm [shape: f32[8,32], index: 2, kind: input, shape index: {}]   ;;  %s2204_s3 = inlined_call_operand.hbm [shape: f32[4,8,8,8], index: 3, kind: input, shape index: {}]   ;;  %s2205_s4 = inlined_call_operand.hbm [shape: f32[4,1,8], index: 4, kind: input, shape index: {}]   ;;  %s2206_s5 = inlined_call_operand.vmem [shape: bf16[32,32], index: 5, kind: input, shape index: {}]   ;;  %s2207_s6 = inlined_call_operand.vmem [shape: f32[1,32], index: 6, kind: input, shape index: {}]   ;;  %s2208_s7 = inlined_call_operand.hbm [shape: f32[2,8,32], index: 7, kind: output, shape index: {}]  }
   0x1   :  { %2213 = sst [smem:[#allocation19_spill]] %s2201_s0 }
   0x2   :  { %2214 = sst [smem:[#allocation20_spill]] %s2203_s2 }
   0x3   :  { %2215 = sst [smem:[#allocation21_spill]] %s2204_s3 }
   0x4   :  { %2216 = sst [smem:[#allocation22_spill]] %s2205_s4 }
   0x5   :  { %12 = vsyncpa [#allocation4], 0 }
   0x6   :  { %14 = vsyncpa [#allocation4 + $0x1], 0 }
   0x7   :  { %15 = vsyncpa [#allocation7], 0 }
   0x8   :  { %17 = vsyncpa [#allocation7 + $0x1], 0 }
   0x9   :  { %18 = vsyncpa [#allocation10], 0 }
   0xa   :  { %19 = vsyncpa [#allocation5], 0 }
   0xb   :  { %21 = vsyncpa [#allocation5 + $0x1], 0  ;;  %s1787_s24 = smov 0   ;;  %s1789_s25 = smov 0  }
   0xc   :  { %s1791_s26 = smov 0   ;;  %s1793_s27 = smov 0  }
   0xd   :  { %s1795_s28 = smov 0   ;;  %s1797_s29 = smov 0  }
   0xe LB: > { %s1818_s30 = sadd.s32 4294967295, %s1696_s29   ;;  %s1183_s8 = sadd.s32 4294967294, %s1696_s29   ;;  %s1696_s29 = sphi %s1797_s29, %s27_s29   ;;  %s1692_s28 = sphi %s1795_s28, %s2244_s28   ;;  %s1688_s27 = sphi %s1793_s27, %s2243_s27   ;;  %s1684_s26 = sphi %s1791_s26, %s2242_s26   ;;  %s1680_s25 = sphi %s1789_s25, %s2241_s25   ;;  %s1676_s24 = sphi %s1787_s24, %s2240_s24  }
   0xf   : > { %p61_p0 = scmp.ne.s32.totalorder %s1680_s25, %s1676_s24  ;;  %p2209_p1 = scmp.eq.s32.totalorder %s1818_s30, 0 }
  0x10   : > { %p234_p3 = scmp.eq.s32.totalorder %s1183_s8, 1  ;;  %p1184_p5 = scmp.ge.s32.totalorder %s1696_s29, 1 }
  0x11   : > { %p1827_p4 = por %p2209_p1, %p61_p0  ;;  %p241_p7 = scmp.lt.s32.totalorder %s1696_s29, 3 }
  0x12   : > { %p1832_p6 = por %p234_p3, %p61_p0  ;;  %s1698_s12 = smov [#allocation8]  }
  0x13   : > { %s2217_s9 = scalar_select %p1827_p4, 1, 0 }
  0x14   : > { %s2218_s10 = scalar_select %p1832_p6, 1, 0 }
  0x15   : > { %p1837_p8 = pnand %p1184_p5, %p241_p7  ;;  %s256_s13 = sshll.u32 %s1698_s12, 4  ;;  %s257_s13 = int_to_ptr.vmem [resolvable:$true] %s256_s13 }
  0x16   : > { %2219 = sst [smem:[#allocation18_spill]] %s2218_s10  ;;  %s1699_s14 = smov [#allocation9]  }
  0x17   : > { %s2220_s11 = scalar_select %p1837_p8, 1, 0 }
  0x18   : > { %p1282_p10 = pneg %p1837_p8  ;;  %s268_s15 = sshll.u32 %s1699_s14, 4  ;;  %s1850_s15 = int_to_ptr.vmem [resolvable:$true] %s268_s15 }
  0x19   : > { %s1700_s17 = smov [#allocation11]   ;;  %s2222_s2 = sld [smem:[#allocation20_spill]] }
  0x1a   : > { %p1846_p11 = pnand %p1282_p10, %p2209_p1  ;;  %s1852_s18 = sshll.u32 %s1700_s17, 4  ;;  %s282_s18 = int_to_ptr.vmem [resolvable:$true] %s1852_s18 }
  0x1c   : > { %p1862_p13 = pneg %p1846_p11 }
  0x1f   : > { %s1458_s21 = scalar_lea.hbm %s2222_s2, 128 }
  0x20   : > { %p1459_p12 = scmp.ne.s32.totalorder %s2222_s2, %s1458_s21  ;;  %p1465_p5 = scmp.lt.u32.totalorder %s1458_s21, %s2222_s2 }
  0x22   : > { %p1461_p0 = pnand %p1862_p13, %p1459_p12 }
  0x24   : > { %p1462_p3 = pneg %p1461_p0 }
  0x26   : > { %p1467_p7 = pnand %p1465_p5, %p1462_p3 }
  0x28   : > { %1470 = shalt.err (!%p1467_p7)
}
  0x29   : > { %s1471_s17 = scalar_lea.vmem %s257_s13, 128  ;;  %p1479_p2 = scmp.lt.s32.totalorder %s257_s13, %s257_s13 }
  0x2a   : > { %p1472_p10 = scmp.ne.s32.totalorder %s257_s13, %s1471_s17  ;;  %p1480_p6 = scmp.lt.s32.totalorder %s1471_s17, %s1471_s17 }
  0x2c   : > { %p1474_p9 = pnand %p1472_p10, %p1862_p13  ;;  %p1481_p4 = por %p1480_p6, %p1479_p2 }
  0x2e   : > { %p1475_p1 = pneg %p1474_p9 }
  0x30   : > { %p1482_p8 = pnand %p1481_p4, %p1475_p1 }
  0x32   : > { %1485 = shalt.err (!%p1482_p8)
}
  0x33   : > { %1285 = dma.hbm_to_vmem [thread:$0]  (!%p1846_p11), %s2222_s2, 128, %s257_s13, [#allocation7]  }
  0x34   : > { %s2224_s3 = sld [smem:[#allocation21_spill]] }
  0x3a   : > { %s1486_s23 = scalar_lea.hbm %s2224_s3, 4096 }
  0x3b   : > { %p1487_p9 = scmp.ne.s32.totalorder %s2224_s3, %s1486_s23  ;;  %p1493_p1 = scmp.lt.u32.totalorder %s1486_s23, %s2224_s3 }
  0x3d   : > { %p1489_p12 = pnand %p1487_p9, %p1862_p13 }
  0x3f   : > { %p1490_p2 = pneg %p1489_p12 }
  0x41   : > { %p1495_p4 = pnand %p1493_p1, %p1490_p2 }
  0x43   : > { %1498 = shalt.err (!%p1495_p4)
}
  0x44   : > { %s1499_s13 = scalar_lea.vmem %s1850_s15, 4096  ;;  %p1507_p3 = scmp.lt.s32.totalorder %s1850_s15, %s1850_s15 }
  0x45   : > { %p1500_p6 = scmp.ne.s32.totalorder %s1850_s15, %s1499_s13  ;;  %p1508_p5 = scmp.lt.s32.totalorder %s1499_s13, %s1499_s13 }
  0x47   : > { %p1502_p8 = pnand %p1500_p6, %p1862_p13  ;;  %p1509_p7 = por %p1508_p5, %p1507_p3 }
  0x49   : > { %p1503_p0 = pneg %p1502_p8 }
  0x4b   : > { %p1510_p10 = pnand %p1509_p7, %p1503_p0 }
  0x4d   : > { %1513 = shalt.err (!%p1510_p10)
}
  0x4e   : > { %s1701_s19 = smov 128   ;;  %s1702_s10 = smov 8  }
  0x4f   : > { %1288 = dma.hbm_to_vmem [thread:$0]  (!%p1846_p11), %s2224_s3, 4096, %s1850_s15, [#allocation10], %s1701_s19, %s1701_s19, %s1702_s10  }
  0x50   : > { %s2225_s4 = sld [smem:[#allocation22_spill]] }
  0x56   : > { %s1514_s12 = scalar_lea.hbm %s2225_s4, 64 }
  0x57   : > { %p1515_p9 = scmp.ne.s32.totalorder %s2225_s4, %s1514_s12  ;;  %p1521_p1 = scmp.lt.u32.totalorder %s1514_s12, %s2225_s4 }
  0x59   : > { %p1517_p12 = pnand %p1515_p9, %p1862_p13 }
  0x5b   : > { %p1518_p2 = pneg %p1517_p12 }
  0x5d   : > { %p1523_p4 = pnand %p1521_p1, %p1518_p2 }
  0x5f   : > { %1526 = shalt.err (!%p1523_p4)
}
  0x60   : > { %s1527_s20 = scalar_lea.vmem %s282_s18, 64  ;;  %p1535_p3 = scmp.lt.s32.totalorder %s282_s18, %s282_s18 }
  0x61   : > { %p1528_p6 = scmp.ne.s32.totalorder %s282_s18, %s1527_s20  ;;  %p1536_p5 = scmp.lt.s32.totalorder %s1527_s20, %s1527_s20 }
  0x63   : > { %p1530_p8 = pnand %p1528_p6, %p1862_p13  ;;  %p1537_p7 = por %p1536_p5, %p1535_p3 }
  0x65   : > { %p1531_p0 = pneg %p1530_p8 }
  0x67   : > { %p1538_p10 = pnand %p1537_p7, %p1531_p0 }
  0x69   : > { %1541 = shalt.err (!%p1538_p10)
}
  0x6a   : > { %s1703_s15 = smov 16   ;;  %s1704_s2 = smov 1  }
  0x6b   : > { %1291 = dma.hbm_to_vmem [thread:$0]  (!%p1846_p11), %s2225_s4, 64, %s282_s18, [#allocation10], %s1703_s15, %s1703_s15, %s1704_s2  }
  0x6c   : > { %s48_s10 = sadd.s32 1, %s1684_s26  ;;  %s39_s21 = sadd.s32 1, %s1692_s28 }
  0x6d   : > { %p55_p13 = scmp.ne.s32.totalorder %s1684_s26, %s1680_s25  ;;  %p41_p9 = scmp.ge.s32.totalorder %s39_s21, 2 }
  0x6e   : > { %p56_p12 = scmp.eq.s32.totalorder %s1696_s29, 0  ;;  %p2226_p2 = scmp.eq.s32.totalorder %s1818_s30, 1 }
  0x6f   : > { %p1306_p4 = scmp.lt.s32.totalorder %s1696_s29, 2  ;;  %s2246_s21 = smov (%p41_p9, %s39_s21), 0 }
  0x70   : > { %p1927_p1 = por %p2226_p2, %p55_p13  ;;  %p57_p6 = por %p56_p12, %p55_p13 }
  0x71   : > { %s1935_s16 = sand.u32 1, %s1684_s26   ;;  %s43_s18 = ssub.s32 %s1692_s28, %s2246_s21 }
  0x72   : > { %p46_p11 = scmp.eq.s32.totalorder %s43_s18, 0  ;;  %s1189_s23 = sshll.u32 %s1935_s16, 3 }
  0x73   : > { %s1190_s12 = sshll.u32 %s1692_s28, 7  ;;  %s2228_s0 = sld [smem:[#allocation19_spill]] }
  0x74   : > { %s1942_s14 = scalar_select %p46_p11, %s1684_s26, %s48_s10  }
  0x75   : > { %s305_s15 = scalar_lea.vmem [#allocation3], %s1189_s23  ;;  %p1953_p8 = pnand %p1306_p4, %p57_p6 }
  0x76   : > { %s313_s2 = sshll.u32 %s305_s15, 4  ;;  %s1191_s19 = sshll.u32 %s1935_s16, 4  ;;  %s1949_s2 = int_to_ptr.vmem [resolvable:$true] %s313_s2 }
  0x77   : > { %s302_s18 = scalar_lea.sflag [#allocation4], %s1935_s16  ;;  %p1544_p3 = pneg %p1953_p8 }
  0x79   : > { %s1947_s20 = scalar_lea.hbm %s2228_s0, %s1190_s12  ;;  %s1547_s13 = scalar_lea.hbm %s2228_s0, 256 }
  0x7a   : > { %s1542_s12 = scalar_lea.hbm %s1947_s20, 128  ;;  %p1548_p10 = scmp.lt.u32.totalorder %s1947_s20, %s2228_s0 }
  0x7b   : > { %p1543_p0 = scmp.ne.s32.totalorder %s1947_s20, %s1542_s12  ;;  %p1549_p13 = scmp.lt.u32.totalorder %s1547_s13, %s1542_s12 }
  0x7c   : > { %p1551_p12 = scmp.lt.u32.totalorder %s1542_s12, %s1947_s20 }
  0x7d   : > { %p1545_p5 = pnand %p1544_p3, %p1543_p0  ;;  %p1550_p9 = por %p1549_p13, %p1548_p10 }
  0x7f   : > { %p1546_p7 = pneg %p1545_p5  ;;  %p1552_p2 = por %p1551_p12, %p1550_p9 }
  0x81   : > { %p1553_p4 = pnand %p1552_p2, %p1546_p7 }
  0x83   : > { %1556 = shalt.err (!%p1553_p4)
}
  0x84   : > { %s1557_s10 = scalar_lea.vmem %s1949_s2, 128  ;;  %s1705_s23 = smov [#allocation3]  }
  0x85   : > { %p1558_p6 = scmp.ne.s32.totalorder %s1949_s2, %s1557_s10  ;;  %s1562_s17 = sshll.u32 %s1705_s23, 4  ;;  %s1563_s17 = int_to_ptr.vmem [resolvable:$false] %s1562_s17 }
  0x86   : > { %s1564_s3 = scalar_lea.vmem %s1563_s17, 256  ;;  %p1565_p5 = scmp.lt.s32.totalorder %s1949_s2, %s1563_s17 }
  0x87   : > { %p1560_p11 = pnand %p1558_p6, %p1544_p3  ;;  %p1566_p10 = scmp.lt.s32.totalorder %s1564_s3, %s1557_s10 }
  0x89   : > { %p1561_p0 = pneg %p1560_p11  ;;  %p1567_p13 = por %p1566_p10, %p1565_p5 }
  0x8b   : > { %p1568_p9 = pnand %p1567_p13, %p1561_p0 }
  0x8d   : > { %1571 = shalt.err (!%p1568_p9)
}
  0x8e   : > { %1295 = dma.hbm_to_vmem [thread:$0]  (!%p1953_p8), %s1947_s20, 128, %s1949_s2, %s302_s18  }
  0x8f   : > { %s324_s12 = scalar_lea.vmem [#allocation6], %s1191_s19  ;;  %s320_s15 = sand.u32 1, %s1696_s29  }
  0x90   : > { %s331_s13 = sshll.u32 %s324_s12, 4  ;;  %s2230_s23 = sshll.u32 %s1692_s28, 8  ;;  %s1988_s13 = int_to_ptr.vmem [resolvable:$true] %s331_s13 }
  0x91   : > { %s1995_s3 = scalar_lea.hbm %s2202_s1, %s2230_s23  ;;  %s1997_s0 = scalar_lea.sflag [#allocation7], %s320_s15 }
  0x92   : > { %s1572_s4 = scalar_lea.hbm %s1995_s3, 256  ;;  %s1577_s2 = scalar_lea.hbm %s2202_s1, 512 }
  0x93   : > { %p1573_p7 = scmp.ne.s32.totalorder %s1995_s3, %s1572_s4  ;;  %p1578_p4 = scmp.lt.u32.totalorder %s1995_s3, %s2202_s1 }
  0x94   : > { %p1579_p6 = scmp.lt.u32.totalorder %s1577_s2, %s1572_s4  ;;  %p1581_p0 = scmp.lt.u32.totalorder %s1572_s4, %s1995_s3 }
  0x95   : > { %p1575_p12 = pnand %p1573_p7, %p1544_p3 }
  0x96   : > { %p1580_p11 = por %p1579_p6, %p1578_p4 }
  0x97   : > { %p1576_p2 = pneg %p1575_p12 }
  0x98   : > { %p1582_p5 = por %p1581_p0, %p1580_p11 }
  0x9a   : > { %p1583_p10 = pnand %p1582_p5, %p1576_p2 }
  0x9c   : > { %1586 = shalt.err (!%p1583_p10)
}
  0x9d   : > { %s1587_s12 = scalar_lea.vmem %s1988_s13, 256  ;;  %s1706_s15 = smov [#allocation6]  }
  0x9e   : > { %p1588_p13 = scmp.ne.s32.totalorder %s1988_s13, %s1587_s12  ;;  %s1592_s23 = sshll.u32 %s1706_s15, 4  ;;  %s1593_s23 = int_to_ptr.vmem [resolvable:$false] %s1592_s23 }
  0x9f   : > { %s1594_s10 = scalar_lea.vmem %s1593_s23, 512  ;;  %p1595_p12 = scmp.lt.s32.totalorder %s1988_s13, %s1593_s23 }
  0xa0   : > { %p1590_p9 = pnand %p1588_p13, %p1544_p3  ;;  %p1596_p4 = scmp.lt.s32.totalorder %s1594_s10, %s1587_s12 }
  0xa2   : > { %p1591_p7 = pneg %p1590_p9  ;;  %p1597_p6 = por %p1596_p4, %p1595_p12 }
  0xa4   : > { %p1598_p11 = pnand %p1597_p6, %p1591_p7 }
  0xa6   : > { %1601 = shalt.err (!%p1598_p11)
}
  0xa7   : > { %s1707_s4 = smov 64   ;;  %s1708_s17 = smov 4  }
  0xa8   : > { %1298 = dma.hbm_to_vmem [thread:$0]  (!%p1953_p8), %s1995_s3, 256, %s1988_s13, %s1997_s0, %s1707_s4, %s1707_s4, %s1708_s17  }
  0xa9   : > { %p2231_p3 = scmp.ne.s32.totalorder %s2220_s11, 0 }
  0xaa   : > { %s2026_s16 = sand.u32 (!%p2231_p3), 1, %s1680_s25   ;;  %p2232_p2 = scmp.ne.s32.totalorder (!%p2231_p3), %s2217_s9, 0 }
  0xab   : > { %343 = sbr.rel (%p2231_p3) target bundleno = 1324 (0x52c), region = 48  ;;  %s1195_s20 = sshll.u32 (!%p2231_p3), %s2026_s16, 3 }
  0xac   : > { %s346_s2 = scalar_lea.sflag (!%p2231_p3), [#allocation4], %s2026_s16  ;;  %s349_s19 = scalar_lea.vmem (!%p2231_p3), [#allocation3], %s1195_s20 }
  0xb2   : > { %1655 = dma.done.wait (%p2232_p2), %s346_s2, 128  }
  0xb3   : > { %1657 = vsyncadd (%p2232_p2), %s346_s2, 4294967168  ;;  %s354_s0 = sand.u32 1, %s1818_s30   ;;  %s1196_s11 = sshll.u32 %s2026_s16, 4 }
  0xb4   : > { %s355_s8 = scalar_lea.sflag [#allocation7], %s354_s0  ;;  %s2038_s13 = scalar_lea.vmem [#allocation6], %s1196_s11 }
  0xb5   : > { %1659 = dma.done.wait (%p2232_p2), %s355_s8, 256  }
  0xb6   : > { %1661 = vsyncadd (%p2232_p2), %s355_s8, 4294967040  ;;  %p2233_p8 = scmp.eq.s32.totalorder %s1818_s30, 0 }
  0xb8   : > { %1663 = dma.done.wait (%p2233_p8), [#allocation7], 128   ;;  %p2234_p0 = pmov %p2233_p8 }
  0xba   : > { %1665 = vsyncadd (%p2234_p0), [#allocation7], 4294967168  ;;  %p2235_p5 = pmov %p2234_p0 }
  0xbb   : > { %p2236_p10 = pmov %p2234_p0 }
  0xbc   : > { %1667 = dma.done.wait (%p2235_p5), [#allocation10], 4160  }
  0xbd   : > { %1669 = vsyncadd (%p2236_p10), [#allocation10], 4294963136  ;;  %v1709_v0 = vmov 8   ;;  %v1710_v1 = vmov 0   ;;  %v407_v2 = vld [vmem:[%s349_s19] sm:$0xff]  ;;  %v408_v3 = vld [vmem:[#allocation8] sm:$0xff] }
  0xbe   : > { %1407 = vset.pattern.permute.xlu1 %v1709_v0  ;;  %1405 = vset.pattern.permute.xlu0 %v1710_v1  ;;  %v409_v4 = vmul.f32 %v408_v3, %v407_v2  ;;  %v1711_v10 = vmov 9   ;;  %v1712_v11 = vmov 1   ;;  %v1713_v12 = vmov 2   ;;  %v415_v51 = vld [vmem:[#allocation9] sm:$0xff]  ;;  %v423_v52 = vld [vmem:[#allocation9 + $0x8] sm:$0xff]  ;;  %v431_v57 = vld [vmem:[#allocation9 + $0x10] sm:$0xff] }
  0xbf   : > { %v1714_v13 = vmov 10   ;;  %v1715_v14 = vmov 3   ;;  %v1716_v15 = vmov 4   ;;  %v1717_v16 = vmov 11   ;;  %v439_v58 = vld [vmem:[#allocation9 + $0x18] sm:$0xff]  ;;  %v447_v0 = vld [vmem:[#allocation9 + $0x20] sm:$0xff] }
  0xc0   : > { %v411_v5 = vmul.f32 0.70710677, %v409_v4  ;;  %v410_v6 = vmul.f32 0.5, %v409_v4  ;;  %v1718_v17 = vmov 16   ;;  %v1719_v18 = vmov 12   ;;  %v455_v2 = vld [vmem:[#allocation9 + $0x28] sm:$0xff] }
  0xc1   : > { %v1720_v19 = vmov 24   ;;  %v1721_v20 = vmov 5   ;;  %v1722_v21 = vmov 18   ;;  %v1723_v22 = vmov 17   ;;  %s1743_s30 = smov 8   ;;  %s1744_s15 = smov 16  }
  0xc2   : > { %1440 = verf.f32 %v411_v5  ;;  %v1724_v23 = vmov 7   ;;  %v1725_v24 = vmov 13   ;;  %v1726_v25 = vmov 27   ;;  %s1745_s23 = smov 24   ;;  %s1217_s17 = sshll.u32 %s1688_s27, 7 }
  0xc3   : > { %v1727_v26 = vmov 25   ;;  %v1728_v27 = vmov 21   ;;  %v1729_v28 = vmov 6   ;;  %v1730_v29 = vmov 30   ;;  %s405_s2 = scalar_lea.vmem [#allocation12], %s1195_s20  ;;  %s2152_s8 = scalar_lea.hbm %s2208_s7, %s1217_s17 }
  0xc4   : > { %v1731_v30 = vmov 14   ;;  %v1732_v31 = vmov 31   ;;  %v1733_v32 = vmov 26   ;;  %v1734_v33 = vmov 19   ;;  %s1047_s19 = sshll.u32 %s405_s2, 4  ;;  %s1033_s27 = scalar_lea.sflag [#allocation5], %s2026_s16  ;;  %s2154_s19 = int_to_ptr.vmem [resolvable:$true] %s1047_s19 }
  0xc5   : > { %v1735_v34 = vmov 15   ;;  %v1736_v35 = vmov 20   ;;  %v1737_v36 = vmov 28   ;;  %v1738_v37 = vmov 29   ;;  %s1746_s20 = smov [#allocation12]  }
  0xc6   : > { %v1739_v38 = vmov 22   ;;  %v1740_v39 = vmov 23   ;;  %vm478_vm0 = vcmask 64512   ;;  %vm495_vm1 = vcmask 1043456  }
  0xc7   : > { %vm1742_vm2 = vmmov 0   ;;  %vm684_vm3 = vcmask 130112   ;;  %vm822_vm4 = vcmask 195712   ;;  %vm960_vm5 = vcmask 261312  }
  0xc8   : > { %vm987_vm6 = vcmask 261120  }
  0xcc   : > { %v1441_v7 = vpop.eup %1440 }
  0xcd   : > { %v413_v8 = vadd.f32 1.0, %v1441_v7 }
  0xcf   : > { %v2052_v9 = vmul.f32 %v413_v8, %v410_v6  ;;  %v463_v8 = vld [vmem:[#allocation9 + $0x30] sm:$0xff] }
  0xd1   : > { %551 = vperm.xlu1 %1407, %v2052_v9   ;;  %418 = vperm.xlu0 %1405, %v2052_v9  }
  0xd5   : > { %1408 = vset.pattern.permute.xlu1 %v1711_v10  ;;  %1406 = vset.pattern.permute.xlu0 %v1712_v11 }
  0xd6   : > { %558 = vperm.xlu1 %1408, %v2052_v9   ;;  %425 = vperm.xlu0 %1406, %v2052_v9  }
  0xda   : > { %1409 = vset.pattern.permute.xlu1 %v1713_v12  ;;  %1410 = vset.pattern.permute.xlu0 %v1714_v13 }
  0xdb   : > { %433 = vperm.xlu1 %1409, %v2052_v9   ;;  %566 = vperm.xlu0 %1410, %v2052_v9  }
  0xdf   : > { %1411 = vset.pattern.permute.xlu1 %v1715_v14  ;;  %1413 = vset.pattern.permute.xlu0 %v1716_v15 }
  0xe0   : > { %441 = vperm.xlu1 %1411, %v2052_v9   ;;  %449 = vperm.xlu0 %1413, %v2052_v9  }
  0xe4   : > { %1412 = vset.pattern.permute.xlu1 %v1717_v16  ;;  %1416 = vset.pattern.permute.xlu0 %v1718_v17  ;;  %v556_v17 = vld [vmem:[#allocation9 + $0x48] sm:$0xff] }
  0xe5   : > { %574 = vperm.xlu1 %1412, %v2052_v9   ;;  %689 = vperm.xlu0 %1416, %v2052_v9  }
  0xe9   : > { %1414 = vset.pattern.permute.xlu1 %v1719_v18  ;;  %1419 = vset.pattern.permute.xlu0 %v1720_v19 }
  0xea   : > { %582 = vperm.xlu1 %1414, %v2052_v9   ;;  %827 = vperm.xlu0 %1419, %v2052_v9  }
  0xee   : > { %1415 = vset.pattern.permute.xlu1 %v1721_v20  ;;  %1422 = vset.pattern.permute.xlu0 %v1722_v21  ;;  %v549_v20 = vld [vmem:[#allocation9 + $0x40] sm:$0xff]  ;;  %v564_v21 = vld [vmem:[#allocation9 + $0x50] sm:$0xff] }
  0xef   : > { %457 = vperm.xlu1 %1415, %v2052_v9   ;;  %704 = vperm.xlu0 %1422, %v2052_v9  }
  0xf3   : > { %1417 = vset.pattern.permute.xlu1 %v1723_v22  ;;  %1425 = vset.pattern.permute.xlu0 %v1724_v23 }
  0xf4   : > { %696 = vperm.xlu1 %1417, %v2052_v9   ;;  %473 = vperm.xlu0 %1425, %v2052_v9  }
  0xf8   : > { %1418 = vset.pattern.permute.xlu1 %v1725_v24  ;;  %1428 = vset.pattern.permute.xlu0 %v1726_v25  ;;  %v572_v24 = vld [vmem:[#allocation9 + $0x58] sm:$0xff] }
  0xf9   : > { %590 = vperm.xlu1 %1418, %v2052_v9   ;;  %850 = vperm.xlu0 %1428, %v2052_v9  }
  0xfd   : > { %1420 = vset.pattern.permute.xlu1 %v1727_v26  ;;  %1431 = vset.pattern.permute.xlu0 %v1728_v27  ;;  %v580_v27 = vld [vmem:[#allocation9 + $0x60] sm:$0xff] }
  0xfe   : > { %834 = vperm.xlu1 %1420, %v2052_v9   ;;  %728 = vperm.xlu0 %1431, %v2052_v9  }
 0x102   : > { %1421 = vset.pattern.permute.xlu1 %v1729_v28  ;;  %1434 = vset.pattern.permute.xlu0 %v1730_v29 }
 0x103   : > { %465 = vperm.xlu1 %1421, %v2052_v9   ;;  %874 = vperm.xlu0 %1434, %v2052_v9  }
 0x107   : > { %1423 = vset.pattern.permute.xlu1 %v1731_v30  ;;  %1437 = vset.pattern.permute.xlu0 %v1732_v31 }
 0x108   : > { %598 = vperm.xlu1 %1423, %v2052_v9  }
 0x10c   : > { %1424 = vset.pattern.permute.xlu1 %v1733_v32 }
 0x10d   : > { %842 = vperm.xlu1 %1424, %v2052_v9  }
 0x111   : > { %1426 = vset.pattern.permute.xlu1 %v1734_v33 }
 0x112   : > { %712 = vperm.xlu1 %1426, %v2052_v9  }
 0x116   : > { %1427 = vset.pattern.permute.xlu1 %v1735_v34  ;;  %v596_v34 = vld [vmem:[#allocation9 + $0x70] sm:$0xff] }
 0x117   : > { %606 = vperm.xlu1 %1427, %v2052_v9  }
 0x11b   : > { %1429 = vset.pattern.permute.xlu1 %v1736_v35 }
 0x11c   : > { %720 = vperm.xlu1 %1429, %v2052_v9  }
 0x120   : > { %1430 = vset.pattern.permute.xlu1 %v1737_v36 }
 0x121   : > { %858 = vperm.xlu1 %1430, %v2052_v9  }
 0x125   : > { %1432 = vset.pattern.permute.xlu1 %v1738_v37 }
 0x126   : > { %866 = vperm.xlu1 %1432, %v2052_v9  }
 0x12a   : > { %1433 = vset.pattern.permute.xlu1 %v1739_v38 }
 0x12b   : > { %736 = vperm.xlu1 %1433, %v2052_v9  }
 0x12f   : > { %1435 = vset.pattern.permute.xlu1 %v1740_v39 }
 0x130   : > { %744 = vperm.xlu1 %1435, %v2052_v9  }
 0x134   : > { %1436 = vset.pattern.permute.xlu1 %v1732_v31  ;;  %v588_v31 = vld [vmem:[#allocation9 + $0x68] sm:$0xff] }
 0x135   : > { %882 = vperm.xlu1 %1436, %v2052_v9   ;;  %v471_v9 = vld [vmem:[#allocation9 + $0x38] sm:$0xff] }
 0x150   : > { %v552_v40 = vpop.permute.xlu1 %551  ;;  %v419_v43 = vpop.permute.xlu0 %418 }
 0x151   : > { %v421_v54 = vmul.f32 %v419_v43, %v415_v51  ;;  %v554_v25 = vmul.f32 %v552_v40, %v549_v20 }
 0x155   : > { %v559_v41 = vpop.permute.xlu1 %558  ;;  %v426_v45 = vpop.permute.xlu0 %425 }
 0x156   : > { %v428_v55 = vmul.f32 %v426_v45, %v423_v52  ;;  %v561_v22 = vmul.f32 %v559_v41, %v556_v17  ;;  %v604_v41 = vld [vmem:[#allocation9 + $0x78] sm:$0xff]  ;;  %v702_v52 = vld [vmem:[#allocation9 + $0x90] sm:$0xff] }
 0x158   : > { %v429_v60 = vadd.f32 %v428_v55, %v421_v54  ;;  %v562_v29 = vadd.f32 %v561_v22, %v554_v25  ;;  %v825_v54 = vld [vmem:[#allocation9 + $0xc0] sm:$0xff]  ;;  %v832_v55 = vld [vmem:[#allocation9 + $0xc8] sm:$0xff]  ;;  %v872_v25 = vld [vmem:[#allocation9 + $0xf0] sm:$0xff] }
 0x15a   : > { %v434_v42 = vpop.permute.xlu1 %433  ;;  %v567_v47 = vpop.permute.xlu0 %566 }
 0x15b   : > { %v436_v61 = vmul.f32 %v434_v42, %v431_v57  ;;  %v569_v26 = vmul.f32 %v567_v47, %v564_v21  ;;  %v687_v47 = vld [vmem:[#allocation9 + $0x80] sm:$0xff] }
 0x15d   : > { %v437_v1 = vadd.f32 %v436_v61, %v429_v60  ;;  %v570_v32 = vadd.f32 %v569_v26, %v562_v29 }
 0x15f   : > { %v442_v44 = vpop.permute.xlu1 %441  ;;  %v450_v49 = vpop.permute.xlu0 %449 }
 0x160   : > { %v444_v63 = vmul.f32 %v442_v44, %v439_v58  ;;  %v452_v5 = vmul.f32 %v450_v49, %v447_v0  ;;  %v694_v49 = vld [vmem:[#allocation9 + $0x88] sm:$0xff]  ;;  %v710_v58 = vld [vmem:[#allocation9 + $0x98] sm:$0xff] }
 0x162   : > { %v445_v4 = vadd.f32 %v444_v63, %v437_v1 }
 0x164   : > { %v575_v46 = vpop.permute.xlu1 %574  ;;  %v2086_v53 = vpop.permute.xlu0 %689  ;;  %v453_v11 = vadd.f32 %v452_v5, %v445_v4 }
 0x165   : > { %v577_v30 = vmul.f32 %v575_v46, %v572_v24 }
 0x167   : > { %v578_v35 = vadd.f32 %v577_v30, %v570_v32 }
 0x169   : > { %v583_v48 = vpop.permute.xlu1 %582  ;;  %v2088_v59 = vpop.permute.xlu0 %827 }
 0x16a   : > { %v585_v33 = vmul.f32 %v583_v48, %v580_v27  ;;  %v692_v48 = vmul.f32 %v2086_v53, %v687_v47  ;;  %v830_v63 = vmul.f32 %v2088_v59, %v825_v54  ;;  %v864_v59 = vld [vmem:[#allocation9 + $0xe8] sm:$0xff] }
 0x16c   : > { %v586_v38 = vadd.f32 %v585_v33, %v578_v35  ;;  %v880_v33 = vld [vmem:[#allocation9 + $0xf8] sm:$0xff] }
 0x16e   : > { %v458_v50 = vpop.permute.xlu1 %457  ;;  %v705_v3 = vpop.permute.xlu0 %704 }
 0x16f   : > { %v460_v7 = vmul.f32 %v458_v50, %v455_v2  ;;  %v707_v61 = vmul.f32 %v705_v3, %v702_v52  ;;  %v718_v2 = vld [vmem:[#allocation9 + $0xa0] sm:$0xff]  ;;  %v734_v3 = vld [vmem:[#allocation9 + $0xb0] sm:$0xff] }
 0x171   : > { %v461_v13 = vadd.f32 %v460_v7, %v453_v11 }
 0x173   : > { %v697_v56 = vpop.permute.xlu1 %696  ;;  %v474_v10 = vpop.permute.xlu0 %473 }
 0x174   : > { %v476_v15 = vmul.f32 %v474_v10, %v471_v9  ;;  %v699_v51 = vmul.f32 %v697_v56, %v694_v49  ;;  %v848_v9 = vld [vmem:[#allocation9 + $0xd8] sm:$0xff]  ;;  %v726_v10 = vld [vmem:[#allocation9 + $0xa8] sm:$0xff] }
 0x176   : > { %v700_v60 = vadd.f32 %v699_v51, %v692_v48  ;;  %v491_v48 = vld [vmem:[%s2038_s13] sm:$0xf]  ;;  %v1741_v51 = vmov 0.0  }
 0x177   : > { %1232 = vmatprep.subr.bf16.mxu0 %v1741_v51  ;;  %v497_v52 = vsel %vm495_vm1, %v491_v48, 0  ;;  %1234 = vmatprep.mubr.msk.bf16.mxu0 %vm1742_vm2, %v1741_v51 }
 0x178   : > { %v591_v62 = vpop.permute.xlu1 %590  ;;  %v851_v1 = vpop.permute.xlu0 %850  ;;  %1233 = vmatpush3.bf16.msra.mxu0 %v497_v52  ;;  %1238 = vmatprep.subr.bf16.mxu1 %v1741_v51 }
 0x179   : > { %v593_v36 = vmul.f32 %v591_v62, %v588_v31  ;;  %v840_v62 = vld [vmem:[#allocation9 + $0xd0] sm:$0xff]  ;;  %1240 = vmatprep.mubr.msk.bf16.mxu1 %vm1742_vm2, %v1741_v51  ;;  %1244 = vmatprep.subr.bf16.mxu0 %v1741_v51 }
 0x17b   : > { %v594_v42 = vadd.f32 %v593_v36, %v586_v38 }
 0x17d   : > { %v835_v6 = vpop.permute.xlu1 %834  ;;  %v729_v11 = vpop.permute.xlu0 %728 }
 0x17e   : > { %v837_v0 = vmul.f32 %v835_v6, %v832_v55  ;;  %v731_v17 = vmul.f32 %v729_v11, %v726_v10 }
 0x180   : > { %v838_v56 = vadd.f32 %v837_v0, %v830_v63 }
 0x182   : > { %v466_v12 = vpop.permute.xlu1 %465  ;;  %v875_v26 = vpop.permute.xlu0 %874 }
 0x183   : > { %v468_v14 = vmul.f32 %v466_v12, %v463_v8  ;;  %v708_v8 = vadd.f32 %v707_v61, %v700_v60  ;;  %v877_v32 = vmul.f32 %v875_v26, %v872_v25  ;;  %v1203_v61 = vld [vmem:[%s2038_s13 + $0x4] sm:$0xf] }
 0x185   : > { %v469_v16 = vadd.f32 %v468_v14, %v461_v13  ;;  %v856_v13 = vld [vmem:[#allocation9 + $0xe0] sm:$0xff] }
 0x187   : > { %v599_v18 = vpop.permute.xlu1 %598  ;;  %v2090_v19 = vadd.f32 %v476_v15, %v469_v16  ;;  %v853_v15 = vmul.f32 %v851_v1, %v848_v9 }
 0x188   : > { %v601_v39 = vmul.f32 %v599_v18, %v596_v34 }
 0x189   : > { %v479_v23 = vsel %vm478_vm0, %v2090_v19, -inf }
 0x18a   : > { %480 = vmax.xlane.f32.xlu0 %v479_v23  ;;  %v602_v44 = vadd.f32 %v601_v39, %v594_v42  ;;  %v742_v23 = vld [vmem:[#allocation9 + $0xb8] sm:$0xff] }
 0x18c   : > { %v843_v28 = vpop.permute.xlu1 %842 }
 0x18d   : > { %v845_v5 = vmul.f32 %v843_v28, %v840_v62  ;;  %v629_v62 = vsel %vm495_vm1, %v1203_v61, 0 }
 0x18e   : > { %1239 = vmatpush3.bf16.msra.mxu1 %v629_v62 }
 0x18f   : > { %v846_v14 = vadd.f32 %v845_v5, %v838_v56  ;;  %1250 = vmatprep.subr.bf16.mxu1 %v1741_v51 }
 0x191   : > { %v713_v37 = vpop.permute.xlu1 %712  ;;  %v854_v21 = vadd.f32 %v853_v15, %v846_v14 }
 0x192   : > { %v715_v4 = vmul.f32 %v713_v37, %v710_v58 }
 0x194   : > { %v716_v12 = vadd.f32 %v715_v4, %v708_v8  ;;  %v1206_v8 = vld [vmem:[%s2038_s13 + $0x8] sm:$0xf] }
 0x195   : > { %v767_v56 = vsel %vm495_vm1, %v1206_v8, 0 }
 0x196   : > { %v607_v43 = vpop.permute.xlu1 %606 }
 0x197   : > { %v609_v45 = vmul.f32 %v607_v43, %v604_v41 }
 0x199   : > { %v2094_v40 = vadd.f32 %v609_v45, %v602_v44 }
 0x19b   : > { %v721_v50 = vpop.permute.xlu1 %720  ;;  %v611_v46 = vsel %vm478_vm0, %v2094_v40, -inf }
 0x19c   : > { %612 = vmax.xlane.f32.xlu1 %v611_v46  ;;  %v723_v53 = vmul.f32 %v721_v50, %v718_v2 }
 0x19e   : > { %v724_v16 = vadd.f32 %v723_v53, %v716_v12  ;;  %v1209_v12 = vld [vmem:[%s2038_s13 + $0xc] sm:$0xf]  ;;  %s1602_s13 = scalar_lea.vmem %s2154_s19, 128 }
 0x19f   : > { %v905_v15 = vsel %vm495_vm1, %v1209_v12, 0  ;;  %p1603_p13 = scmp.ne.s32.totalorder %s2154_s19, %s1602_s13 }
 0x1a0   : > { %v859_v57 = vpop.permute.xlu1 %858  ;;  %v732_v24 = vadd.f32 %v731_v17, %v724_v16 }
 0x1a1   : > { %v861_v18 = vmul.f32 %v859_v57, %v856_v13  ;;  %p1604_p9 = pnand %p1603_p13, %p1927_p1 }
 0x1a3   : > { %v862_v27 = vadd.f32 %v861_v18, %v854_v21  ;;  %p1605_p7 = pneg %p1604_p9 }
 0x1a5   : > { %v867_v7 = vpop.permute.xlu1 %866 }
 0x1a6   : > { %v869_v22 = vmul.f32 %v867_v7, %v864_v59 }
 0x1a8   : > { %v870_v31 = vadd.f32 %v869_v22, %v862_v27  ;;  %v1202_v22 = vld [vmem:[#allocation11] ss:$0 sm:$0xff] }
 0x1aa   : > { %v737_v6 = vpop.permute.xlu1 %736  ;;  %v878_v37 = vadd.f32 %v877_v32, %v870_v31 }
 0x1ab   : > { %v739_v20 = vmul.f32 %v737_v6, %v734_v3 }
 0x1ad   : > { %v740_v29 = vadd.f32 %v739_v20, %v732_v24 }
 0x1af   : > { %v745_v28 = vpop.permute.xlu1 %744 }
 0x1b0   : > { %v747_v30 = vmul.f32 %v745_v28, %v742_v23  ;;  %v1205_v28 = vld [vmem:[#allocation11 + $0x1] ss:$0 sm:$0xff] }
 0x1b2   : > { %v748_v34 = vadd.f32 %v747_v30, %v740_v29 }
 0x1b4   : > { %v883_v35 = vpop.permute.xlu1 %882  ;;  %v749_v36 = vsel %vm478_vm0, %v748_v34, -inf }
 0x1b5   : > { %v885_v38 = vmul.f32 %v883_v35, %v880_v33  ;;  %750 = vmax.xlane.f32.xlu0 %v749_v36  ;;  %v1439_v35 = vld [vmem:[%s2206_s5 + $0x8] sm:$0xff]   ;;  %v1208_v36 = vld [vmem:[#allocation11 + $0x2] ss:$0 sm:$0xff] }
 0x1b7   : > { %v886_v39 = vadd.f32 %v885_v38, %v878_v37 }
 0x1b9   : > { %v887_v41 = vsel %vm478_vm0, %v886_v39, -inf }
 0x1ba   : > { %888 = vmax.xlane.f32.xlu0 %v887_v41 }
 0x217   : > { %v481_v42 = vpop.xlane.xlu0 %480 }
 0x218   : > { %v482_v43 = vsub.f32 %v2090_v19, %v481_v42 }
 0x21a   : > { %v483_v44 = vmul.f32 1.442695, %v482_v43  ;;  %v1211_v43 = vld [vmem:[#allocation11 + $0x3] ss:$0 sm:$0xff] }
 0x21c   : > { %1442 = vpow2.f32 %v483_v44 }
 0x226   : > { %v1443_v45 = vpop.eup %1442 }
 0x227   : > { %v485_v47 = vsel %vm478_vm0, %v1443_v45, 0.0 }
 0x228   : > { %486 = vadd.xlane.f32.xlu1 %v485_v47 }
 0x229   : > { %v613_v49 = vpop.xlane.xlu1 %612 }
 0x22a   : > { %v614_v50 = vsub.f32 %v2094_v40, %v613_v49 }
 0x22c   : > { %v615_v46 = vmul.f32 1.442695, %v614_v50 }
 0x22e   : > { %1444 = vpow2.f32 %v615_v46 }
 0x238   : > { %v1445_v19 = vpop.eup %1444 }
 0x239   : > { %v617_v40 = vsel %vm478_vm0, %v1445_v19, 0.0 }
 0x23a   : > { %618 = vadd.xlane.f32.xlu0 %v617_v40  ;;  %v1212_v40 = vld [vmem:[%s2207_s6] ss:$0 sm:$0xff] }
 0x242   : > { %v751_v54 = vpop.xlane.xlu0 %750 }
 0x243   : > { %v752_v55 = vsub.f32 %v748_v34, %v751_v54  ;;  %v1438_v34 = vld [vmem:[%s2206_s5] sm:$0xff]  }
 0x245   : > { %v753_v57 = vmul.f32 1.442695, %v752_v55 }
 0x247   : > { %1446 = vpow2.f32 %v753_v57  ;;  %v889_v58 = vpop.xlane.xlu0 %888 }
 0x248   : > { %v890_v60 = vsub.f32 %v886_v39, %v889_v58 }
 0x24a   : > { %v891_v63 = vmul.f32 1.442695, %v890_v60 }
 0x24c   : > { %1448 = vpow2.f32 %v891_v63 }
 0x251   : > { %v1447_v0 = vpop.eup %1446 }
 0x252   : > { %v755_v1 = vsel %vm478_vm0, %v1447_v0, 0.0 }
 0x253   : > { %756 = vadd.xlane.f32.xlu1 %v755_v1 }
 0x256   : > { %v1449_v2 = vpop.eup %1448 }
 0x257   : > { %v893_v4 = vsel %vm478_vm0, %v1449_v2, 0.0 }
 0x258   : > { %894 = vadd.xlane.f32.xlu0 %v893_v4 }
 0x2b5   : > { %v487_v5 = vpop.xlane.xlu1 %486 }
 0x2b6   : > { %1450 = vrcp.f32 %v487_v5 }
 0x2c0   : > { %v1451_v7 = vpop.eup %1450 }
 0x2c1   : > { %v489_v9 = vmul.f32 %v1451_v7, %v1443_v45 }
 0x2c3   : > { %v490_v53 = vpack.c.bf16 %v489_v9, %v489_v9 }
 0x2c5   : > { %1235 = vmatmul.mubr.msk.bf16.vlgmr.msra.gmra.mrb[0].mxu0 %vm478_vm0, %v490_v53 }
 0x2c6   : > { %1245 = vmatpush3.bf16.msra.mxu0 %v767_v56  ;;  %1246 = vmatprep.mubr.msk.bf16.mxu0 %vm1742_vm2, %v1741_v51 }
 0x2c7   : > { %v619_v10 = vpop.xlane.xlu0 %618  ;;  %1256 = vmatprep.subr.bf16.mxu0 %v1741_v51 }
 0x2c8   : > { %1452 = vrcp.f32 %v619_v10 }
 0x2d2   : > { %v1453_v11 = vpop.eup %1452 }
 0x2d3   : > { %v621_v13 = vmul.f32 %v1453_v11, %v1445_v19 }
 0x2d5   : > { %v622_v14 = vpack.c.bf16 %v621_v13, %v621_v13 }
 0x2d7   : > { %1241 = vmatmul.mubr.msk.bf16.vlgmr.msra.gmra.mrb[0].mxu1 %vm478_vm0, %v622_v14 }
 0x2d8   : > { %1251 = vmatpush3.bf16.msra.mxu1 %v905_v15  ;;  %1252 = vmatprep.mubr.msk.bf16.mxu1 %vm1742_vm2, %v1741_v51 }
 0x2e0   : > { %v757_v3 = vpop.xlane.xlu1 %756 }
 0x2e1   : > { %1454 = vrcp.f32 %v757_v3 }
 0x2e5   : > { %v895_v16 = vpop.xlane.xlu0 %894 }
 0x2e6   : > { %1456 = vrcp.f32 %v895_v16 }
 0x2eb   : > { %v1455_v17 = vpop.eup %1454 }
 0x2ec   : > { %v759_v59 = vmul.f32 %v1455_v17, %v1447_v0 }
 0x2ee   : > { %v760_v6 = vpack.c.bf16 %v759_v59, %v759_v59 }
 0x2f0   : > { %v1457_v18 = vpop.eup %1456  ;;  %1247 = vmatmul.mubr.msk.bf16.vlgmr.msra.gmra.mrb[4].mxu0 %vm478_vm0, %v760_v6 }
 0x2f1   : > { %v897_v20 = vmul.f32 %v1457_v18, %v1449_v2  ;;  %1260 = vmatprep.mubr.msk.bf16.mxu0 %vm1742_vm2, %v1741_v51  ;;  %1257 = vmatpush3.bf16.msra.mxu0 %v1438_v34 }
 0x2f2   : > { %1258 = vmatprep.subr.bf16.mxu0 %v1741_v51 }
 0x2f3   : > { %v898_v21 = vpack.c.bf16 %v897_v20, %v897_v20 }
 0x2f5   : > { %1253 = vmatmul.mubr.msk.bf16.vlgmr.msra.gmra.mrb[4].mxu1 %vm478_vm0, %v898_v21  ;;  %1259 = vmatpush3.bf16.msra.mxu0 %v1439_v35 }
 0x398   : > { %v533_v23 = vpop.f32.mrb[0].mxu0 }
 0x399   : > { %v546_v24 = vmul.f32 %v1202_v22, %v533_v23  ;;  %v1236_v25 = vpop.f32.mrb[1].mxu0 }
 0x39a   : > { %v536_v26 = vpop.f32.mrb[2].mxu0 }
 0x39b   : > { %547 = vst.msk [vmem:[#allocation2] sm:$0xff] %vm478_vm0, %v546_v24  ;;  %v1237_v27 = vpop.f32.mrb[3].mxu0 }
 0x3aa   : > { %v665_v29 = vpop.f32.mrb[0].mxu1 }
 0x3ab   : > { %v679_v30 = vmul.f32 %v1205_v28, %v665_v29  ;;  %v1242_v31 = vpop.f32.mrb[1].mxu1 }
 0x3ac   : > { %v668_v32 = vpop.f32.mrb[2].mxu1 }
 0x3ad   : > { %681 = vrot.lane.b32.xlu1 %v679_v30, %s1743_s30  ;;  %v1243_v33 = vpop.f32.mrb[3].mxu1  ;;  %s1606_s30 = sshll.u32 %s1746_s20, 4  ;;  %s1607_s30 = int_to_ptr.vmem [resolvable:$false] %s1606_s30 }
 0x3ae   : > { %s1608_s9 = scalar_lea.vmem %s1607_s30, 256  ;;  %p1609_p12 = scmp.lt.s32.totalorder %s2154_s19, %s1607_s30 }
 0x3af   : > { %p1610_p4 = scmp.lt.s32.totalorder %s1608_s9, %s1602_s13 }
 0x3b1   : > { %p1611_p6 = por %p1610_p4, %p1609_p12 }
 0x3b3   : > { %p1612_p11 = pnand %p1611_p6, %p1605_p7 }
 0x3c3   : > { %v803_v37 = vpop.f32.mrb[4].mxu0 }
 0x3c4   : > { %v817_v38 = vmul.f32 %v1208_v36, %v803_v37  ;;  %v1248_v39 = vpop.f32.mrb[5].mxu0 }
 0x3c5   : > { %v806_v41 = vpop.f32.mrb[6].mxu0 }
 0x3c6   : > { %v1249_v42 = vpop.f32.mrb[7].mxu0  ;;  %819 = vrot.lane.b32.xlu0 %v817_v38, %s1744_s15 }
 0x3c8   : > { %v941_v44 = vpop.f32.mrb[4].mxu1 }
 0x3c9   : > { %v955_v45 = vmul.f32 %v1211_v43, %v941_v44  ;;  %v1254_v47 = vpop.f32.mrb[5].mxu1 }
 0x3ca   : > { %v944_v49 = vpop.f32.mrb[6].mxu1 }
 0x3cb   : > { %957 = vrot.lane.b32.xlu1 %v955_v45, %s1745_s23  ;;  %v1255_v50 = vpop.f32.mrb[7].mxu1 }
 0x41f   : > { %v682_v46 = vpop.permute.xlu1 %681 }
 0x420   : > { %685 = vst.msk [vmem:[#allocation2] sm:$0xff] %vm684_vm3, %v682_v46 }
 0x438   : > { %v820_v48 = vpop.permute.xlu0 %819 }
 0x439   : > { %823 = vst.msk [vmem:[#allocation2] sm:$0xff] %vm822_vm4, %v820_v48 }
 0x43d   : > { %v958_v51 = vpop.permute.xlu1 %957 }
 0x43e   : > { %961 = vst.msk [vmem:[#allocation2] sm:$0xff] %vm960_vm5, %v958_v51 }
 0x445   : > { %v962_v52 = vld [vmem:[#allocation2] sm:$0xff] }
 0x446   : > { %v963_v19 = vpack.c.bf16 %v962_v52, %v962_v52 }
 0x448   : > { %1261 = vmatmul.mubr.msk.bf16.vlgmr.msra.gmra.mrb[8].mxu0 %vm987_vm6, %v963_v19 }
 0x51b   : > { %v1025_v54 = vpop.f32.mrb[8].mxu0 }
 0x51c   : > { %v1026_v55 = vadd.f32 %v1212_v40, %v1025_v54  ;;  %v1262_v57 = vpop.f32.mrb[9].mxu0 }
 0x51d   : > { %v1028_v58 = vpop.f32.mrb[10].mxu0 }
 0x51e   : > { %v1263_v60 = vpop.f32.mrb[11].mxu0  ;;  %1031 = vst.msk [vmem:[%s405_s2] sm:$0xff] %vm987_vm6, %v1026_v55 }
 0x51f   : > { %1615 = shalt.err (!%p1612_p11)
}
 0x520   : > { %s1616_s16 = scalar_lea.hbm %s2152_s8, 128  ;;  %s1620_s12 = scalar_lea.hbm %s2208_s7, 256 }
 0x521   : > { %p1617_p3 = scmp.ne.s32.totalorder %s2152_s8, %s1616_s16  ;;  %p1621_p0 = scmp.lt.u32.totalorder %s2152_s8, %s2208_s7 }
 0x522   : > { %p1622_p5 = scmp.lt.u32.totalorder %s1620_s12, %s1616_s16  ;;  %p1624_p13 = scmp.lt.u32.totalorder %s1616_s16, %s2152_s8 }
 0x523   : > { %p1618_p2 = pnand %p1617_p3, %p1927_p1 }
 0x524   : > { %p1623_p10 = por %p1622_p5, %p1621_p0 }
 0x525   : > { %p1619_p8 = pneg %p1618_p2 }
 0x526   : > { %p1625_p9 = por %p1624_p13, %p1623_p10 }
 0x528   : > { %p1626_p7 = pnand %p1625_p9, %p1619_p8 }
 0x52a   : > { %1629 = shalt.err (!%p1626_p7)
}
 0x52b   : > { %1280 = dma.vmem_to_hbm [thread:$0]  (%p1927_p1), %s2154_s19, 128, %s2152_s8, %s1033_s27  }
 0x52c PF: > { %s2237_s10 = sld [smem:[#allocation18_spill]]  ;;  %s1059_s4 = sand.u32 1, %s1676_s24  }
 0x52d   : > { %p2239_p4 = scmp.ge.s32.totalorder %s1696_s29, 2  ;;  %s1060_s17 = scalar_lea.sflag [#allocation5], %s1059_s4 }
 0x532   : > { %p2238_p12 = scmp.ne.s32.totalorder %s2237_s10, 0 }
 0x534   : > { %p1300_p6 = pnand %p2239_p4, %p2238_p12 }
 0x536   : > { %1671 = dma.done.wait (!%p1300_p6), %s1060_s17, 128  }
 0x537   : > { %1673 = vsyncadd (!%p1300_p6), %s1060_s17, 4294967168  ;;  %s27_s29 = sadd.s32 1, %s1696_s29   ;;  %s2240_s24 = smov %s1680_s25 }
 0x538   : > { %p24_p11 = scmp.ge.s32.totalorder %s27_s29, 4   ;;  %s2241_s25 = smov %s1684_s26 }
 0x539   : > { %s2242_s26 = smov %s1942_s14  ;;  %s2243_s27 = smov %s1692_s28 }
 0x53a   : > { %s2244_s28 = smov %s2246_s21  ;;  %26 = sbr.rel (!%p24_p11) target bundleno = 14 (0xe), region = 157 }
 0x541   :  { %1065 = vsyncpa [#allocation4], 1 }
 0x542   :  { %1067 = vsyncpa [#allocation4 + $0x1], 1 }
 0x543   :  { %1068 = vsyncpa [#allocation7], 1 }
 0x544   :  { %1070 = vsyncpa [#allocation7 + $0x1], 1 }
 0x545   :  { %1071 = vsyncpa [#allocation10], 1 }
 0x546   :  { %1072 = vsyncpa [#allocation5], 1 }
 0x547   :  { %1074 = vsyncpa [#allocation5 + $0x1], 1 }

</bundles_post_ra>
